<compile_context>
chip_gen: v7x
topology: tpu7x:2x2x1
jax: 0.10.0
libtpu: 0.0.40
codegen_flags: <defaults>
</compile_context>

<pallas_src>
import functools

import numpy as np
import jax
import jax.numpy as jnp
from jax import lax
from jax.experimental import pallas as pl
from jax.experimental.pallas import tpu as pltpu

LEAKY_SLOPE = 0.2


def _leaky(x):
    return jnp.where(x >= 0, x, LEAKY_SLOPE * x)


def _disc_block_kernel(x_ref, w1_ref, b1_ref, w2_ref, b2_ref, out_ref,
                       pad_ref, col_ref, *, K, Cin, H, W, blur2d):
    Bb = x_ref.shape[0]                  # samples per grid step (static)
    P = K // 2
    Ho = H // 2
    WC = W * Cin                         # fused W*Cin lane width of the working layout
    WpC = (W + 2 * P) * Cin              # padded fused lane width
    lo = P * Cin                         # lane offset of the interior inside pad_ref
    f32 = jnp.float32

    # Zero ONLY the halo (top/bottom rows + left/right lane strips).  The interior is fully
    # overwritten before each of its three uses, so the zero halo is reused across all of them.
    pad_ref[:, 0:P, :] = jnp.zeros((Bb, P, WpC), f32)
    pad_ref[:, P + H:P + H + P, :] = jnp.zeros((Bb, P, WpC), f32)
    pad_ref[:, :, 0:lo] = jnp.zeros((Bb, H + 2 * P, lo), f32)
    pad_ref[:, :, lo + WC:lo + WC + lo] = jnp.zeros((Bb, H + 2 * P, lo), f32)

    def conv_matmul(w_ref, b_ref):
        # Fused-layout im2col: K*K dense 64-lane slab copies (cast to bf16 on write), then ONE
        # MXU matmul against block-diagonal weights (bf16 operands, f32 accumulation).  The kw
        # tap shift is a static lane-offset read (XLU rotate on load), the kh shift a
        # sublane-offset read; no lane-sparse writes anywhere.
        for kh in range(K):
            for kw in range(K):
                t = (kh * K + kw) * WC
                col_ref[:, :, t:t + WC] = pad_ref[
                    :, kh:kh + H, kw * Cin:kw * Cin + WC].astype(jnp.bfloat16)
        lhs = col_ref[...].reshape(Bb * H, K * K * WC)
        return jnp.dot(lhs, w_ref[...], preferred_element_type=f32) + b_ref[...]

    # ---------------- EqualizedConv 1 + LeakyReLU (result stays in registers) ----------------
    pad_ref[:, P:P + H, lo:lo + WC] = x_ref[...]
    a1 = _leaky(conv_matmul(w1_ref, b1_ref)).reshape(Bb, H, WC)     # (Bb, H, W*C1), C1 == Cin

    # ------- BlurLayer: depthwise 3x3 with fixed normalized taps, VPU multiply-adds -------
    if blur2d is not None:
        pad_ref[:, P:P + H, lo:lo + WC] = a1
        acc = None
        for kh in range(K):
            for kw in range(K):
                c = blur2d[kh][kw]
                if c == 0.0:
                    continue
                term = c * pad_ref[:, kh:kh + H, kw * Cin:kw * Cin + WC]
                acc = term if acc is None else acc + term
        a1 = acc

    # ------ EqualizedConv 2: the W-half of the 2x2 average pool is folded into w2_ref ------
    pad_ref[:, P:P + H, lo:lo + WC] = a1
    o2w = conv_matmul(w2_ref, b2_ref)             # (Bb*H, Wo*C2), already averaged over W pairs

    # ------ remaining H-half of Downscale2D + LeakyReLU, lane-dense output store ------
    WoC2 = o2w.shape[1]
    pooled = 0.5 * jnp.sum(o2w.reshape(Bb * Ho, 2, WoC2), axis=1)   # H-pair average
    out_ref[...] = _leaky(pooled).reshape(Bb, Ho, WoC2)


def discriminator_block_forward(x_nchw, params, *, kernel_size=3,
                                gain=float(np.sqrt(2.0)), use_wscale=True,
                                blur_filter=(1, 2, 1), batch_blocks=None):
    """Pallas implementation of DiscriminatorBlock.forward (x in NCHW, like PyTorch)."""
    w1, b1, w2, b2 = params
    B, Cin, H, W = x_nchw.shape
    K = kernel_size
    P = K // 2
    C1 = w1.shape[0]
    C2 = w2.shape[0]
    assert C1 == Cin and w1.shape[1] == Cin and w2.shape[1] == Cin, \
        "module wiring requires output_channels1 == input_channels (conv2 takes input_channels)"
    assert H % 2 == 0 and W % 2 == 0
    Ho, Wo = H // 2, W // 2

    # 2 batch blocks -> one per TensorCore on v7x; on single-TC chips the extra grid step
    # costs ~0.35us, which is negligible.  Set batch_blocks=1 to fully fold the batch.
    if batch_blocks is None:
        batch_blocks = 2 if (B % 2 == 0 and B >= 2) else 1
    assert B % batch_blocks == 0
    Bb = B // batch_blocks

    s = float(gain / np.sqrt(Cin * K * K)) if use_wscale else 1.0   # fan_in = Cin*K*K (both convs)

    # ---- wrapper-side glue (plain XLA): NCHW -> fused (B, H, W*Cin), weight packing ----
    x_f = jnp.transpose(x_nchw, (0, 2, 3, 1)).astype(jnp.float32).reshape(B, H, W * Cin)

    # Block-diagonal weights for the fused lane layout.  With
    #   col[b, h, (kh*K+kw)*W*Cin + w*Cin + ci] = x_pad[b, h+kh, w+kw, ci],
    # conv1 uses  W1[(kh*K+kw)*W*Cin + w'*Cin + ci, w*C1 + co] = [w'==w]     * s*w1[co,ci,kh,kw]
    # conv2 uses  W2[(kh*K+kw)*W*Cin + w'*Cin + ci, u*C2 + co] = pool[w', u] * s*w2[co,ci,kh,kw]
    # where pool is the exact 2->1 average matrix, so the W half of Downscale2D is free & exact.
    wt1 = jnp.transpose(w1.astype(jnp.float32) * s, (2, 3, 1, 0))   # (K, K, Cin, C1)
    wt2 = jnp.transpose(w2.astype(jnp.float32) * s, (2, 3, 1, 0))   # (K, K, Cin, C2)
    eye_w = jnp.eye(W, dtype=jnp.float32)                                        # (W, W)
    pool_w = jnp.asarray(np.kron(np.eye(Wo), [[0.5], [0.5]]), jnp.float32)       # (W, Wo)
    kkwc = K * K * W * Cin
    w1_k = jnp.einsum('uv,hkio->hkuivo', eye_w, wt1).reshape(kkwc, W * C1).astype(jnp.bfloat16)
    w2_k = jnp.einsum('uv,hkio->hkuivo', pool_w, wt2).reshape(kkwc, Wo * C2).astype(jnp.bfloat16)
    b1_k = jnp.tile(b1.astype(jnp.float32), W).reshape(1, W * C1)
    b2_k = jnp.tile(b2.astype(jnp.float32), Wo).reshape(1, Wo * C2)

    if blur_filter is not None:
        f = np.asarray(blur_filter, np.float64)
        k2d = np.outer(f, f)
        k2d = k2d / k2d.sum()
        assert k2d.shape == (K, K), "blur kernel size must match conv kernel size here"
        blur2d = tuple(tuple(float(v) for v in row) for row in k2d)
    else:
        blur2d = None

    kernel = functools.partial(_disc_block_kernel, K=K, Cin=Cin, H=H, W=W, blur2d=blur2d)

    flops = int(2 * B * H * kkwc * (W * C1 + Wo * C2)    # two block-diagonal matmuls
                + 2 * B * H * W * Cin * K * K            # blur multiply-adds
                + 2 * B * Ho * Wo * C2)                  # H-half of pooling
    # HBM traffic only (VMEM scratch traffic intentionally excluded; advisory hint).
    bytes_accessed = int(B * H * W * Cin * 4
                         + kkwc * (W * C1 + Wo * C2) * 2
                         + (W * C1 + Wo * C2) * 4
                         + B * Ho * Wo * C2 * 4)

    out = pl.pallas_call(
        kernel,
        out_shape=jax.ShapeDtypeStruct((B, Ho, Wo * C2), jnp.float32),   # lane-dense output slab
        grid=(batch_blocks,),
        in_specs=[
            pl.BlockSpec((Bb, H, W * Cin), lambda g: (g, 0, 0)),
            pl.BlockSpec((kkwc, W * C1), lambda g: (0, 0)),
            pl.BlockSpec((1, W * C1), lambda g: (0, 0)),
            pl.BlockSpec((kkwc, Wo * C2), lambda g: (0, 0)),
            pl.BlockSpec((1, Wo * C2), lambda g: (0, 0)),
        ],
        out_specs=pl.BlockSpec((Bb, Ho, Wo * C2), lambda g: (g, 0, 0)),
        scratch_shapes=[
            pltpu.VMEM((Bb, H + 2 * P, (W + 2 * P) * Cin), jnp.float32),  # padded buffer, reused x3
            pltpu.VMEM((Bb, H, kkwc), jnp.bfloat16),                      # bf16 fused im2col
        ],
        compiler_params=pltpu.CompilerParams(dimension_semantics=("parallel",)),
        cost_estimate=pl.CostEstimate(flops=flops, transcendentals=0,
                                      bytes_accessed=bytes_accessed),
    )(x_f, w1_k, b1_k, w2_k, b2_k)

    # glue back to NCHW
    return jnp.transpose(out.reshape(B, Ho, Wo, C2), (0, 3, 1, 2))


def reference_forward(x_nchw, params, *, kernel_size, gain, use_wscale, blur_filter):
    """Pure-JAX replica of the PyTorch module (NCHW), mirroring the kernel's bf16 MXU inputs."""
    w1, b1, w2, b2 = params
    B, Cin, H, W = x_nchw.shape
    K = kernel_size
    P = K // 2
    s = float(gain / np.sqrt(Cin * K * K)) if use_wscale else 1.0
    bf16 = jnp.bfloat16

    def econv(x, w, b):
        y = lax.conv_general_dilated(x.astype(bf16), (w * s).astype(bf16), (1, 1), "SAME",
                                     dimension_numbers=("NCHW", "OIHW", "NCHW"),
                                     preferred_element_type=jnp.float32)
        return y + b.reshape(1, -1, 1, 1)

    def leaky(v):
        return jnp.where(v >= 0, v, LEAKY_SLOPE * v)

    h1 = leaky(econv(x_nchw, w1, b1))

    if blur_filter is not None:
        f = np.asarray(blur_filter, np.float64)
        k2d = np.outer(f, f)
        k2d = k2d / k2d.sum()
        hp = jnp.pad(h1, ((0, 0), (0, 0), (P, P), (P, P)))
        acc = jnp.zeros_like(h1)
        for kh in range(K):
            for kw in range(K):
                acc = acc + float(k2d[kh, kw]) * hp[:, :, kh:kh + H, kw:kw + W]
        h1 = acc

    c2 = econv(h1, w2, b2)
    pooled = c2.reshape(B, c2.shape[1], H // 2, 2, W // 2, 2).mean(axis=(3, 5))
    return leaky(pooled)


if __name__ == "__main__":
    # DiscriminatorBlock config: input_channels=4, output_channels1=4 (== input_channels, as the
    # module's conv2 wiring requires), output_channels2=8, kernel_size=3, gain=sqrt(2),
    # use_wscale=True, blur_filter=[1,2,1], activation=LeakyReLU(0.2), conv_dim=2,
    # use_labels=False, resolution 16 -> 8.
    B, Cin, H, W = 2, 4, 16, 16
    C1, C2, K = Cin, 8, 3
    gain = float(np.sqrt(2.0))
    blur_filter = (1, 2, 1)

    key = jax.random.PRNGKey(0)
    ks = jax.random.split(key, 5)
    x = jax.random.normal(ks[0], (B, Cin, H, W), jnp.float32)
    w1 = jax.random.normal(ks[1], (C1, Cin, K, K), jnp.float32)    # PyTorch OIHW
    b1 = 0.1 * jax.random.normal(ks[2], (C1,), jnp.float32)
    w2 = jax.random.normal(ks[3], (C2, Cin, K, K), jnp.float32)
    b2 = 0.1 * jax.random.normal(ks[4], (C2,), jnp.float32)
    params = (w1, b1, w2, b2)

    out = discriminator_block_forward(x, params, kernel_size=K, gain=gain,
                                      use_wscale=True, blur_filter=blur_filter)
    out = jax.block_until_ready(out)

    ref = reference_forward(x, params, kernel_size=K, gain=gain,
                            use_wscale=True, blur_filter=blur_filter)
    ref = jax.block_until_ready(ref)

    assert out.shape == (B, C2, H // 2, W // 2), out.shape
    if not np.allclose(np.asarray(out), np.asarray(ref), rtol=5e-3, atol=5e-3):
        diff = float(np.max(np.abs(np.asarray(out) - np.asarray(ref))))
        raise SystemExit(f"kernel/reference mismatch, max abs diff = {diff}")
    print("KERNEL_OK")
</pallas_src>

<mosaic_0001>
module attributes {stable_mosaic.version = 11 : i64} {
  func.func @_disc_block_kernel(%arg0: i32, %arg1: memref<1x16x64xf32, #tpu.memory_space<vmem>>, %arg2: memref<576x64xbf16, #tpu.memory_space<vmem>>, %arg3: memref<1x64xf32, #tpu.memory_space<vmem>>, %arg4: memref<576x64xbf16, #tpu.memory_space<vmem>>, %arg5: memref<1x64xf32, #tpu.memory_space<vmem>>, %arg6: memref<1x8x64xf32, #tpu.memory_space<vmem>>, %arg7: memref<1x18x72xf32, #tpu.memory_space<vmem>>, %arg8: memref<1x16x576xbf16, #tpu.memory_space<vmem>>) attributes {dimension_semantics = [#tpu.dimension_semantics<parallel>], iteration_bounds = array<i64: 2>, scalar_prefetch = 0 : i64, scratch_operands = 2 : i64, tpu.core_type = #tpu.core_type<tc>, window_params = [{transform_indices = @transform_0, window_bounds = array<i64: 1, 16, 64>}, {pipeline_mode = #tpu.pipeline_mode<synchronous>, transform_indices = @transform_1, window_bounds = array<i64: 576, 64>}, {pipeline_mode = #tpu.pipeline_mode<synchronous>, transform_indices = @transform_2, window_bounds = array<i64: 1, 64>}, {pipeline_mode = #tpu.pipeline_mode<synchronous>, transform_indices = @transform_3, window_bounds = array<i64: 576, 64>}, {pipeline_mode = #tpu.pipeline_mode<synchronous>, transform_indices = @transform_4, window_bounds = array<i64: 1, 64>}, {transform_indices = @transform_5, window_bounds = array<i64: 1, 8, 64>}]} {
    %cst = arith.constant 0.000000e+00 : f32
    %0 = vector.broadcast %cst : f32 to vector<1x1x72xf32>
    %c0 = arith.constant 0 : index
    %c0_0 = arith.constant 0 : index
    %c0_1 = arith.constant 0 : index
    %1 = vector.load %arg7[%c0, %c0_0, %c0_1] : memref<1x18x72xf32, #tpu.memory_space<vmem>>, vector<1x1x72xf32>
    tpu.vector_store %arg7[%c0, %c0_0, %c0_1], %0 {strides = array<i32>} : memref<1x18x72xf32, #tpu.memory_space<vmem>>, vector<1x1x72xf32>,
    %cst_2 = arith.constant 0.000000e+00 : f32
    %2 = vector.broadcast %cst_2 : f32 to vector<1x1x72xf32>
    %c0_3 = arith.constant 0 : index
    %c17 = arith.constant 17 : index
    %c0_4 = arith.constant 0 : index
    %3 = vector.load %arg7[%c0_3, %c17, %c0_4] : memref<1x18x72xf32, #tpu.memory_space<vmem>>, vector<1x1x72xf32>
    tpu.vector_store %arg7[%c0_3, %c17, %c0_4], %2 {strides = array<i32>} : memref<1x18x72xf32, #tpu.memory_space<vmem>>, vector<1x1x72xf32>,
    %cst_5 = arith.constant 0.000000e+00 : f32
    %4 = vector.broadcast %cst_5 : f32 to vector<1x18x4xf32>
    %c0_6 = arith.constant 0 : index
    %c0_7 = arith.constant 0 : index
    %c0_8 = arith.constant 0 : index
    %5 = vector.load %arg7[%c0_6, %c0_7, %c0_8] : memref<1x18x72xf32, #tpu.memory_space<vmem>>, vector<1x18x4xf32>
    tpu.vector_store %arg7[%c0_6, %c0_7, %c0_8], %4 {strides = array<i32>} : memref<1x18x72xf32, #tpu.memory_space<vmem>>, vector<1x18x4xf32>,
    %cst_9 = arith.constant 0.000000e+00 : f32
    %6 = vector.broadcast %cst_9 : f32 to vector<1x18x4xf32>
    %c0_10 = arith.constant 0 : index
    %c0_11 = arith.constant 0 : index
    %c68 = arith.constant 68 : index
    %7 = vector.load %arg7[%c0_10, %c0_11, %c68] : memref<1x18x72xf32, #tpu.memory_space<vmem>>, vector<1x18x4xf32>
    tpu.vector_store %arg7[%c0_10, %c0_11, %c68], %6 {strides = array<i32>} : memref<1x18x72xf32, #tpu.memory_space<vmem>>, vector<1x18x4xf32>,
    %c0_12 = arith.constant 0 : index
    %c0_13 = arith.constant 0 : index
    %c0_14 = arith.constant 0 : index
    %8 = vector.load %arg1[%c0_12, %c0_13, %c0_14] : memref<1x16x64xf32, #tpu.memory_space<vmem>>, vector<1x16x64xf32>
    %c0_15 = arith.constant 0 : index
    %c1 = arith.constant 1 : index
    %c4 = arith.constant 4 : index
    %9 = vector.load %arg7[%c0_15, %c1, %c4] : memref<1x18x72xf32, #tpu.memory_space<vmem>>, vector<1x16x64xf32>
    tpu.vector_store %arg7[%c0_15, %c1, %c4], %8 {strides = array<i32>} : memref<1x18x72xf32, #tpu.memory_space<vmem>>, vector<1x16x64xf32>,
    %c0_16 = arith.constant 0 : index
    %c0_17 = arith.constant 0 : index
    %c0_18 = arith.constant 0 : index
    %10 = vector.load %arg7[%c0_16, %c0_17, %c0_18] : memref<1x18x72xf32, #tpu.memory_space<vmem>>, vector<1x16x64xf32>
    %11 = arith.truncf %10 : vector<1x16x64xf32> to vector<1x16x64xbf16>
    %c0_19 = arith.constant 0 : index
    %c0_20 = arith.constant 0 : index
    %c0_21 = arith.constant 0 : index
    %12 = vector.load %arg8[%c0_19, %c0_20, %c0_21] : memref<1x16x576xbf16, #tpu.memory_space<vmem>>, vector<1x16x64xbf16>
    tpu.vector_store %arg8[%c0_19, %c0_20, %c0_21], %11 {strides = array<i32>} : memref<1x16x576xbf16, #tpu.memory_space<vmem>>, vector<1x16x64xbf16>,
    %c0_22 = arith.constant 0 : index
    %c0_23 = arith.constant 0 : index
    %c4_24 = arith.constant 4 : index
    %13 = vector.load %arg7[%c0_22, %c0_23, %c4_24] : memref<1x18x72xf32, #tpu.memory_space<vmem>>, vector<1x16x64xf32>
    %14 = arith.truncf %13 : vector<1x16x64xf32> to vector<1x16x64xbf16>
    %c0_25 = arith.constant 0 : index
    %c0_26 = arith.constant 0 : index
    %c64 = arith.constant 64 : index
    %15 = vector.load %arg8[%c0_25, %c0_26, %c64] : memref<1x16x576xbf16, #tpu.memory_space<vmem>>, vector<1x16x64xbf16>
    tpu.vector_store %arg8[%c0_25, %c0_26, %c64], %14 {strides = array<i32>} : memref<1x16x576xbf16, #tpu.memory_space<vmem>>, vector<1x16x64xbf16>,
    %c0_27 = arith.constant 0 : index
    %c0_28 = arith.constant 0 : index
    %c8 = arith.constant 8 : index
    %16 = vector.load %arg7[%c0_27, %c0_28, %c8] : memref<1x18x72xf32, #tpu.memory_space<vmem>>, vector<1x16x64xf32>
    %17 = arith.truncf %16 : vector<1x16x64xf32> to vector<1x16x64xbf16>
    %c0_29 = arith.constant 0 : index
    %c0_30 = arith.constant 0 : index
    %c128 = arith.constant 128 : index
    %18 = vector.load %arg8[%c0_29, %c0_30, %c128] : memref<1x16x576xbf16, #tpu.memory_space<vmem>>, vector<1x16x64xbf16>
    tpu.vector_store %arg8[%c0_29, %c0_30, %c128], %17 {strides = array<i32>} : memref<1x16x576xbf16, #tpu.memory_space<vmem>>, vector<1x16x64xbf16>,
    %c0_31 = arith.constant 0 : index
    %c1_32 = arith.constant 1 : index
    %c0_33 = arith.constant 0 : index
    %19 = vector.load %arg7[%c0_31, %c1_32, %c0_33] : memref<1x18x72xf32, #tpu.memory_space<vmem>>, vector<1x16x64xf32>
    %20 = arith.truncf %19 : vector<1x16x64xf32> to vector<1x16x64xbf16>
    %c0_34 = arith.constant 0 : index
    %c0_35 = arith.constant 0 : index
    %c192 = arith.constant 192 : index
    %21 = vector.load %arg8[%c0_34, %c0_35, %c192] : memref<1x16x576xbf16, #tpu.memory_space<vmem>>, vector<1x16x64xbf16>
    tpu.vector_store %arg8[%c0_34, %c0_35, %c192], %20 {strides = array<i32>} : memref<1x16x576xbf16, #tpu.memory_space<vmem>>, vector<1x16x64xbf16>,
    %c0_36 = arith.constant 0 : index
    %c1_37 = arith.constant 1 : index
    %c4_38 = arith.constant 4 : index
    %22 = vector.load %arg7[%c0_36, %c1_37, %c4_38] : memref<1x18x72xf32, #tpu.memory_space<vmem>>, vector<1x16x64xf32>
    %23 = arith.truncf %22 : vector<1x16x64xf32> to vector<1x16x64xbf16>
    %c0_39 = arith.constant 0 : index
    %c0_40 = arith.constant 0 : index
    %c256 = arith.constant 256 : index
    %24 = vector.load %arg8[%c0_39, %c0_40, %c256] : memref<1x16x576xbf16, #tpu.memory_space<vmem>>, vector<1x16x64xbf16>
    tpu.vector_store %arg8[%c0_39, %c0_40, %c256], %23 {strides = array<i32>} : memref<1x16x576xbf16, #tpu.memory_space<vmem>>, vector<1x16x64xbf16>,
    %c0_41 = arith.constant 0 : index
    %c1_42 = arith.constant 1 : index
    %c8_43 = arith.constant 8 : index
    %25 = vector.load %arg7[%c0_41, %c1_42, %c8_43] : memref<1x18x72xf32, #tpu.memory_space<vmem>>, vector<1x16x64xf32>
    %26 = arith.truncf %25 : vector<1x16x64xf32> to vector<1x16x64xbf16>
    %c0_44 = arith.constant 0 : index
    %c0_45 = arith.constant 0 : index
    %c320 = arith.constant 320 : index
    %27 = vector.load %arg8[%c0_44, %c0_45, %c320] : memref<1x16x576xbf16, #tpu.memory_space<vmem>>, vector<1x16x64xbf16>
    tpu.vector_store %arg8[%c0_44, %c0_45, %c320], %26 {strides = array<i32>} : memref<1x16x576xbf16, #tpu.memory_space<vmem>>, vector<1x16x64xbf16>,
    %c0_46 = arith.constant 0 : index
    %c2 = arith.constant 2 : index
    %c0_47 = arith.constant 0 : index
    %28 = vector.load %arg7[%c0_46, %c2, %c0_47] : memref<1x18x72xf32, #tpu.memory_space<vmem>>, vector<1x16x64xf32>
    %29 = arith.truncf %28 : vector<1x16x64xf32> to vector<1x16x64xbf16>
    %c0_48 = arith.constant 0 : index
    %c0_49 = arith.constant 0 : index
    %c384 = arith.constant 384 : index
    %30 = vector.load %arg8[%c0_48, %c0_49, %c384] : memref<1x16x576xbf16, #tpu.memory_space<vmem>>, vector<1x16x64xbf16>
    tpu.vector_store %arg8[%c0_48, %c0_49, %c384], %29 {strides = array<i32>} : memref<1x16x576xbf16, #tpu.memory_space<vmem>>, vector<1x16x64xbf16>,
    %c0_50 = arith.constant 0 : index
    %c2_51 = arith.constant 2 : index
    %c4_52 = arith.constant 4 : index
    %31 = vector.load %arg7[%c0_50, %c2_51, %c4_52] : memref<1x18x72xf32, #tpu.memory_space<vmem>>, vector<1x16x64xf32>
    %32 = arith.truncf %31 : vector<1x16x64xf32> to vector<1x16x64xbf16>
    %c0_53 = arith.constant 0 : index
    %c0_54 = arith.constant 0 : index
    %c448 = arith.constant 448 : index
    %33 = vector.load %arg8[%c0_53, %c0_54, %c448] : memref<1x16x576xbf16, #tpu.memory_space<vmem>>, vector<1x16x64xbf16>
    tpu.vector_store %arg8[%c0_53, %c0_54, %c448], %32 {strides = array<i32>} : memref<1x16x576xbf16, #tpu.memory_space<vmem>>, vector<1x16x64xbf16>,
    %c0_55 = arith.constant 0 : index
    %c2_56 = arith.constant 2 : index
    %c8_57 = arith.constant 8 : index
    %34 = vector.load %arg7[%c0_55, %c2_56, %c8_57] : memref<1x18x72xf32, #tpu.memory_space<vmem>>, vector<1x16x64xf32>
    %35 = arith.truncf %34 : vector<1x16x64xf32> to vector<1x16x64xbf16>
    %c0_58 = arith.constant 0 : index
    %c0_59 = arith.constant 0 : index
    %c512 = arith.constant 512 : index
    %36 = vector.load %arg8[%c0_58, %c0_59, %c512] : memref<1x16x576xbf16, #tpu.memory_space<vmem>>, vector<1x16x64xbf16>
    tpu.vector_store %arg8[%c0_58, %c0_59, %c512], %35 {strides = array<i32>} : memref<1x16x576xbf16, #tpu.memory_space<vmem>>, vector<1x16x64xbf16>,
    %c0_60 = arith.constant 0 : index
    %c0_61 = arith.constant 0 : index
    %c0_62 = arith.constant 0 : index
    %37 = vector.load %arg8[%c0_60, %c0_61, %c0_62] : memref<1x16x576xbf16, #tpu.memory_space<vmem>>, vector<1x16x576xbf16>
    %38 = vector.shape_cast %37 : vector<1x16x576xbf16> to vector<16x576xbf16>
    %c0_63 = arith.constant 0 : index
    %c0_64 = arith.constant 0 : index
    %39 = vector.load %arg2[%c0_63, %c0_64] : memref<576x64xbf16, #tpu.memory_space<vmem>>, vector<576x64xbf16>
    %cst_65 = arith.constant dense<0.000000e+00> : vector<16x64xf32>
    %40 = tpu.matmul %38, %39, %cst_65 {dimension_numbers = #tpu.dot_dimension_numbers<[1], [0], [0], [1], [0, 0, 1, 1], [], []>} : vector<16x576xbf16>, vector<576x64xbf16>, vector<16x64xf32> -> vector<16x64xf32>
    %c0_66 = arith.constant 0 : index
    %c0_67 = arith.constant 0 : index
    %41 = vector.load %arg3[%c0_66, %c0_67] : memref<1x64xf32, #tpu.memory_space<vmem>>, vector<1x64xf32>
    %42 = vector.broadcast %41 : vector<1x64xf32> to vector<16x64xf32>
    %43 = arith.addf %40, %42 : vector<16x64xf32>
    %cst_68 = arith.constant 0.000000e+00 : f32
    %44 = vector.broadcast %cst_68 : f32 to vector<16x64xf32>
    %45 = arith.cmpf oge, %43, %44 : vector<16x64xf32>
    %cst_69 = arith.constant 2.000000e-01 : f32
    %46 = vector.broadcast %cst_69 : f32 to vector<16x64xf32>
    %47 = arith.mulf %46, %43 : vector<16x64xf32>
    %48 = arith.select %45, %43, %47 : vector<16x64xi1>, vector<16x64xf32>
    %49 = vector.shape_cast %48 : vector<16x64xf32> to vector<1x16x64xf32>
    %c0_70 = arith.constant 0 : index
    %c1_71 = arith.constant 1 : index
    %c4_72 = arith.constant 4 : index
    %50 = vector.load %arg7[%c0_70, %c1_71, %c4_72] : memref<1x18x72xf32, #tpu.memory_space<vmem>>, vector<1x16x64xf32>
    tpu.vector_store %arg7[%c0_70, %c1_71, %c4_72], %49 {strides = array<i32>} : memref<1x18x72xf32, #tpu.memory_space<vmem>>, vector<1x16x64xf32>,
    %c0_73 = arith.constant 0 : index
    %c0_74 = arith.constant 0 : index
    %c0_75 = arith.constant 0 : index
    %51 = vector.load %arg7[%c0_73, %c0_74, %c0_75] : memref<1x18x72xf32, #tpu.memory_space<vmem>>, vector<1x16x64xf32>
    %cst_76 = arith.constant 6.250000e-02 : f32
    %52 = vector.broadcast %cst_76 : f32 to vector<1x16x64xf32>
    %53 = arith.mulf %52, %51 : vector<1x16x64xf32>
    %c0_77 = arith.constant 0 : index
    %c0_78 = arith.constant 0 : index
    %c4_79 = arith.constant 4 : index
    %54 = vector.load %arg7[%c0_77, %c0_78, %c4_79] : memref<1x18x72xf32, #tpu.memory_space<vmem>>, vector<1x16x64xf32>
    %cst_80 = arith.constant 1.250000e-01 : f32
    %55 = vector.broadcast %cst_80 : f32 to vector<1x16x64xf32>
    %56 = arith.mulf %55, %54 : vector<1x16x64xf32>
    %57 = arith.addf %53, %56 : vector<1x16x64xf32>
    %c0_81 = arith.constant 0 : index
    %c0_82 = arith.constant 0 : index
    %c8_83 = arith.constant 8 : index
    %58 = vector.load %arg7[%c0_81, %c0_82, %c8_83] : memref<1x18x72xf32, #tpu.memory_space<vmem>>, vector<1x16x64xf32>
    %cst_84 = arith.constant 6.250000e-02 : f32
    %59 = vector.broadcast %cst_84 : f32 to vector<1x16x64xf32>
    %60 = arith.mulf %59, %58 : vector<1x16x64xf32>
    %61 = arith.addf %57, %60 : vector<1x16x64xf32>
    %c0_85 = arith.constant 0 : index
    %c1_86 = arith.constant 1 : index
    %c0_87 = arith.constant 0 : index
    %62 = vector.load %arg7[%c0_85, %c1_86, %c0_87] : memref<1x18x72xf32, #tpu.memory_space<vmem>>, vector<1x16x64xf32>
    %cst_88 = arith.constant 1.250000e-01 : f32
    %63 = vector.broadcast %cst_88 : f32 to vector<1x16x64xf32>
    %64 = arith.mulf %63, %62 : vector<1x16x64xf32>
    %65 = arith.addf %61, %64 : vector<1x16x64xf32>
    %c0_89 = arith.constant 0 : index
    %c1_90 = arith.constant 1 : index
    %c4_91 = arith.constant 4 : index
    %66 = vector.load %arg7[%c0_89, %c1_90, %c4_91] : memref<1x18x72xf32, #tpu.memory_space<vmem>>, vector<1x16x64xf32>
    %cst_92 = arith.constant 2.500000e-01 : f32
    %67 = vector.broadcast %cst_92 : f32 to vector<1x16x64xf32>
    %68 = arith.mulf %67, %66 : vector<1x16x64xf32>
    %69 = arith.addf %65, %68 : vector<1x16x64xf32>
    %c0_93 = arith.constant 0 : index
    %c1_94 = arith.constant 1 : index
    %c8_95 = arith.constant 8 : index
    %70 = vector.load %arg7[%c0_93, %c1_94, %c8_95] : memref<1x18x72xf32, #tpu.memory_space<vmem>>, vector<1x16x64xf32>
    %cst_96 = arith.constant 1.250000e-01 : f32
    %71 = vector.broadcast %cst_96 : f32 to vector<1x16x64xf32>
    %72 = arith.mulf %71, %70 : vector<1x16x64xf32>
    %73 = arith.addf %69, %72 : vector<1x16x64xf32>
    %c0_97 = arith.constant 0 : index
    %c2_98 = arith.constant 2 : index
    %c0_99 = arith.constant 0 : index
    %74 = vector.load %arg7[%c0_97, %c2_98, %c0_99] : memref<1x18x72xf32, #tpu.memory_space<vmem>>, vector<1x16x64xf32>
    %cst_100 = arith.constant 6.250000e-02 : f32
    %75 = vector.broadcast %cst_100 : f32 to vector<1x16x64xf32>
    %76 = arith.mulf %75, %74 : vector<1x16x64xf32>
    %77 = arith.addf %73, %76 : vector<1x16x64xf32>
    %c0_101 = arith.constant 0 : index
    %c2_102 = arith.constant 2 : index
    %c4_103 = arith.constant 4 : index
    %78 = vector.load %arg7[%c0_101, %c2_102, %c4_103] : memref<1x18x72xf32, #tpu.memory_space<vmem>>, vector<1x16x64xf32>
    %cst_104 = arith.constant 1.250000e-01 : f32
    %79 = vector.broadcast %cst_104 : f32 to vector<1x16x64xf32>
    %80 = arith.mulf %79, %78 : vector<1x16x64xf32>
    %81 = arith.addf %77, %80 : vector<1x16x64xf32>
    %c0_105 = arith.constant 0 : index
    %c2_106 = arith.constant 2 : index
    %c8_107 = arith.constant 8 : index
    %82 = vector.load %arg7[%c0_105, %c2_106, %c8_107] : memref<1x18x72xf32, #tpu.memory_space<vmem>>, vector<1x16x64xf32>
    %cst_108 = arith.constant 6.250000e-02 : f32
    %83 = vector.broadcast %cst_108 : f32 to vector<1x16x64xf32>
    %84 = arith.mulf %83, %82 : vector<1x16x64xf32>
    %85 = arith.addf %81, %84 : vector<1x16x64xf32>
    %c0_109 = arith.constant 0 : index
    %c1_110 = arith.constant 1 : index
    %c4_111 = arith.constant 4 : index
    %86 = vector.load %arg7[%c0_109, %c1_110, %c4_111] : memref<1x18x72xf32, #tpu.memory_space<vmem>>, vector<1x16x64xf32>
    tpu.vector_store %arg7[%c0_109, %c1_110, %c4_111], %85 {strides = array<i32>} : memref<1x18x72xf32, #tpu.memory_space<vmem>>, vector<1x16x64xf32>,
    %c0_112 = arith.constant 0 : index
    %c0_113 = arith.constant 0 : index
    %c0_114 = arith.constant 0 : index
    %87 = vector.load %arg7[%c0_112, %c0_113, %c0_114] : memref<1x18x72xf32, #tpu.memory_space<vmem>>, vector<1x16x64xf32>
    %88 = arith.truncf %87 : vector<1x16x64xf32> to vector<1x16x64xbf16>
    %c0_115 = arith.constant 0 : index
    %c0_116 = arith.constant 0 : index
    %c0_117 = arith.constant 0 : index
    %89 = vector.load %arg8[%c0_115, %c0_116, %c0_117] : memref<1x16x576xbf16, #tpu.memory_space<vmem>>, vector<1x16x64xbf16>
    tpu.vector_store %arg8[%c0_115, %c0_116, %c0_117], %88 {strides = array<i32>} : memref<1x16x576xbf16, #tpu.memory_space<vmem>>, vector<1x16x64xbf16>,
    %c0_118 = arith.constant 0 : index
    %c0_119 = arith.constant 0 : index
    %c4_120 = arith.constant 4 : index
    %90 = vector.load %arg7[%c0_118, %c0_119, %c4_120] : memref<1x18x72xf32, #tpu.memory_space<vmem>>, vector<1x16x64xf32>
    %91 = arith.truncf %90 : vector<1x16x64xf32> to vector<1x16x64xbf16>
    %c0_121 = arith.constant 0 : index
    %c0_122 = arith.constant 0 : index
    %c64_123 = arith.constant 64 : index
    %92 = vector.load %arg8[%c0_121, %c0_122, %c64_123] : memref<1x16x576xbf16, #tpu.memory_space<vmem>>, vector<1x16x64xbf16>
    tpu.vector_store %arg8[%c0_121, %c0_122, %c64_123], %91 {strides = array<i32>} : memref<1x16x576xbf16, #tpu.memory_space<vmem>>, vector<1x16x64xbf16>,
    %c0_124 = arith.constant 0 : index
    %c0_125 = arith.constant 0 : index
    %c8_126 = arith.constant 8 : index
    %93 = vector.load %arg7[%c0_124, %c0_125, %c8_126] : memref<1x18x72xf32, #tpu.memory_space<vmem>>, vector<1x16x64xf32>
    %94 = arith.truncf %93 : vector<1x16x64xf32> to vector<1x16x64xbf16>
    %c0_127 = arith.constant 0 : index
    %c0_128 = arith.constant 0 : index
    %c128_129 = arith.constant 128 : index
    %95 = vector.load %arg8[%c0_127, %c0_128, %c128_129] : memref<1x16x576xbf16, #tpu.memory_space<vmem>>, vector<1x16x64xbf16>
    tpu.vector_store %arg8[%c0_127, %c0_128, %c128_129], %94 {strides = array<i32>} : memref<1x16x576xbf16, #tpu.memory_space<vmem>>, vector<1x16x64xbf16>,
    %c0_130 = arith.constant 0 : index
    %c1_131 = arith.constant 1 : index
    %c0_132 = arith.constant 0 : index
    %96 = vector.load %arg7[%c0_130, %c1_131, %c0_132] : memref<1x18x72xf32, #tpu.memory_space<vmem>>, vector<1x16x64xf32>
    %97 = arith.truncf %96 : vector<1x16x64xf32> to vector<1x16x64xbf16>
    %c0_133 = arith.constant 0 : index
    %c0_134 = arith.constant 0 : index
    %c192_135 = arith.constant 192 : index
    %98 = vector.load %arg8[%c0_133, %c0_134, %c192_135] : memref<1x16x576xbf16, #tpu.memory_space<vmem>>, vector<1x16x64xbf16>
    tpu.vector_store %arg8[%c0_133, %c0_134, %c192_135], %97 {strides = array<i32>} : memref<1x16x576xbf16, #tpu.memory_space<vmem>>, vector<1x16x64xbf16>,
    %c0_136 = arith.constant 0 : index
    %c1_137 = arith.constant 1 : index
    %c4_138 = arith.constant 4 : index
    %99 = vector.load %arg7[%c0_136, %c1_137, %c4_138] : memref<1x18x72xf32, #tpu.memory_space<vmem>>, vector<1x16x64xf32>
    %100 = arith.truncf %99 : vector<1x16x64xf32> to vector<1x16x64xbf16>
    %c0_139 = arith.constant 0 : index
    %c0_140 = arith.constant 0 : index
    %c256_141 = arith.constant 256 : index
    %101 = vector.load %arg8[%c0_139, %c0_140, %c256_141] : memref<1x16x576xbf16, #tpu.memory_space<vmem>>, vector<1x16x64xbf16>
    tpu.vector_store %arg8[%c0_139, %c0_140, %c256_141], %100 {strides = array<i32>} : memref<1x16x576xbf16, #tpu.memory_space<vmem>>, vector<1x16x64xbf16>,
    %c0_142 = arith.constant 0 : index
    %c1_143 = arith.constant 1 : index
    %c8_144 = arith.constant 8 : index
    %102 = vector.load %arg7[%c0_142, %c1_143, %c8_144] : memref<1x18x72xf32, #tpu.memory_space<vmem>>, vector<1x16x64xf32>
    %103 = arith.truncf %102 : vector<1x16x64xf32> to vector<1x16x64xbf16>
    %c0_145 = arith.constant 0 : index
    %c0_146 = arith.constant 0 : index
    %c320_147 = arith.constant 320 : index
    %104 = vector.load %arg8[%c0_145, %c0_146, %c320_147] : memref<1x16x576xbf16, #tpu.memory_space<vmem>>, vector<1x16x64xbf16>
    tpu.vector_store %arg8[%c0_145, %c0_146, %c320_147], %103 {strides = array<i32>} : memref<1x16x576xbf16, #tpu.memory_space<vmem>>, vector<1x16x64xbf16>,
    %c0_148 = arith.constant 0 : index
    %c2_149 = arith.constant 2 : index
    %c0_150 = arith.constant 0 : index
    %105 = vector.load %arg7[%c0_148, %c2_149, %c0_150] : memref<1x18x72xf32, #tpu.memory_space<vmem>>, vector<1x16x64xf32>
    %106 = arith.truncf %105 : vector<1x16x64xf32> to vector<1x16x64xbf16>
    %c0_151 = arith.constant 0 : index
    %c0_152 = arith.constant 0 : index
    %c384_153 = arith.constant 384 : index
    %107 = vector.load %arg8[%c0_151, %c0_152, %c384_153] : memref<1x16x576xbf16, #tpu.memory_space<vmem>>, vector<1x16x64xbf16>
    tpu.vector_store %arg8[%c0_151, %c0_152, %c384_153], %106 {strides = array<i32>} : memref<1x16x576xbf16, #tpu.memory_space<vmem>>, vector<1x16x64xbf16>,
    %c0_154 = arith.constant 0 : index
    %c2_155 = arith.constant 2 : index
    %c4_156 = arith.constant 4 : index
    %108 = vector.load %arg7[%c0_154, %c2_155, %c4_156] : memref<1x18x72xf32, #tpu.memory_space<vmem>>, vector<1x16x64xf32>
    %109 = arith.truncf %108 : vector<1x16x64xf32> to vector<1x16x64xbf16>
    %c0_157 = arith.constant 0 : index
    %c0_158 = arith.constant 0 : index
    %c448_159 = arith.constant 448 : index
    %110 = vector.load %arg8[%c0_157, %c0_158, %c448_159] : memref<1x16x576xbf16, #tpu.memory_space<vmem>>, vector<1x16x64xbf16>
    tpu.vector_store %arg8[%c0_157, %c0_158, %c448_159], %109 {strides = array<i32>} : memref<1x16x576xbf16, #tpu.memory_space<vmem>>, vector<1x16x64xbf16>,
    %c0_160 = arith.constant 0 : index
    %c2_161 = arith.constant 2 : index
    %c8_162 = arith.constant 8 : index
    %111 = vector.load %arg7[%c0_160, %c2_161, %c8_162] : memref<1x18x72xf32, #tpu.memory_space<vmem>>, vector<1x16x64xf32>
    %112 = arith.truncf %111 : vector<1x16x64xf32> to vector<1x16x64xbf16>
    %c0_163 = arith.constant 0 : index
    %c0_164 = arith.constant 0 : index
    %c512_165 = arith.constant 512 : index
    %113 = vector.load %arg8[%c0_163, %c0_164, %c512_165] : memref<1x16x576xbf16, #tpu.memory_space<vmem>>, vector<1x16x64xbf16>
    tpu.vector_store %arg8[%c0_163, %c0_164, %c512_165], %112 {strides = array<i32>} : memref<1x16x576xbf16, #tpu.memory_space<vmem>>, vector<1x16x64xbf16>,
    %c0_166 = arith.constant 0 : index
    %c0_167 = arith.constant 0 : index
    %c0_168 = arith.constant 0 : index
    %114 = vector.load %arg8[%c0_166, %c0_167, %c0_168] : memref<1x16x576xbf16, #tpu.memory_space<vmem>>, vector<1x16x576xbf16>
    %115 = vector.shape_cast %114 : vector<1x16x576xbf16> to vector<16x576xbf16>
    %c0_169 = arith.constant 0 : index
    %c0_170 = arith.constant 0 : index
    %116 = vector.load %arg4[%c0_169, %c0_170] : memref<576x64xbf16, #tpu.memory_space<vmem>>, vector<576x64xbf16>
    %cst_171 = arith.constant dense<0.000000e+00> : vector<16x64xf32>
    %117 = tpu.matmul %115, %116, %cst_171 {dimension_numbers = #tpu.dot_dimension_numbers<[1], [0], [0], [1], [0, 0, 1, 1], [], []>} : vector<16x576xbf16>, vector<576x64xbf16>, vector<16x64xf32> -> vector<16x64xf32>
    %c0_172 = arith.constant 0 : index
    %c0_173 = arith.constant 0 : index
    %118 = vector.load %arg5[%c0_172, %c0_173] : memref<1x64xf32, #tpu.memory_space<vmem>>, vector<1x64xf32>
    %119 = vector.broadcast %118 : vector<1x64xf32> to vector<16x64xf32>
    %120 = arith.addf %117, %119 : vector<16x64xf32>
    %121 = vector.shape_cast %120 : vector<16x64xf32> to vector<8x2x64xf32>
    %cst_174 = arith.constant dense<0.000000e+00> : vector<8x64xf32>
    %122 = vector.multi_reduction <add>, %121, %cst_174 [1] : vector<8x2x64xf32> to vector<8x64xf32>
    %cst_175 = arith.constant 5.000000e-01 : f32
    %123 = vector.broadcast %cst_175 : f32 to vector<8x64xf32>
    %124 = arith.mulf %123, %122 : vector<8x64xf32>
    %cst_176 = arith.constant 0.000000e+00 : f32
    %125 = vector.broadcast %cst_176 : f32 to vector<8x64xf32>
    %126 = arith.cmpf oge, %124, %125 : vector<8x64xf32>
    %cst_177 = arith.constant 2.000000e-01 : f32
    %127 = vector.broadcast %cst_177 : f32 to vector<8x64xf32>
    %128 = arith.mulf %127, %124 : vector<8x64xf32>
    %129 = arith.select %126, %124, %128 : vector<8x64xi1>, vector<8x64xf32>
    %130 = vector.shape_cast %129 : vector<8x64xf32> to vector<1x8x64xf32>
    %c0_178 = arith.constant 0 : index
    %c0_179 = arith.constant 0 : index
    %c0_180 = arith.constant 0 : index
    %131 = vector.load %arg6[%c0_178, %c0_179, %c0_180] : memref<1x8x64xf32, #tpu.memory_space<vmem>>, vector<1x8x64xf32>
    tpu.vector_store %arg6[%c0_178, %c0_179, %c0_180], %130 {strides = array<i32>} : memref<1x8x64xf32, #tpu.memory_space<vmem>>, vector<1x8x64xf32>,
    return
  }
  func.func @transform_0(%arg0: i32) -> (i32, i32, i32) {
    %c0_i32 = arith.constant 0 : i32
    %c0_i32_0 = arith.constant 0 : i32
    %c0_i32_1 = arith.constant 0 : i32
    return %arg0, %c0_i32, %c0_i32_0 : i32, i32, i32
  }
  func.func @transform_1(%arg0: i32) -> (i32, i32) {
    %c0_i32 = arith.constant 0 : i32
    %c0_i32_0 = arith.constant 0 : i32
    %c0_i32_1 = arith.constant 0 : i32
    return %c0_i32, %c0_i32_0 : i32, i32
  }
  func.func @transform_2(%arg0: i32) -> (i32, i32) {
    %c0_i32 = arith.constant 0 : i32
    %c0_i32_0 = arith.constant 0 : i32
    %c0_i32_1 = arith.constant 0 : i32
    return %c0_i32, %c0_i32_0 : i32, i32
  }
  func.func @transform_3(%arg0: i32) -> (i32, i32) {
    %c0_i32 = arith.constant 0 : i32
    %c0_i32_0 = arith.constant 0 : i32
    %c0_i32_1 = arith.constant 0 : i32
    return %c0_i32, %c0_i32_0 : i32, i32
  }
  func.func @transform_4(%arg0: i32) -> (i32, i32) {
    %c0_i32 = arith.constant 0 : i32
    %c0_i32_0 = arith.constant 0 : i32
    %c0_i32_1 = arith.constant 0 : i32
    return %c0_i32, %c0_i32_0 : i32, i32
  }
  func.func @transform_5(%arg0: i32) -> (i32, i32, i32) {
    %c0_i32 = arith.constant 0 : i32
    %c0_i32_0 = arith.constant 0 : i32
    %c0_i32_1 = arith.constant 0 : i32
    return %arg0, %c0_i32, %c0_i32_0 : i32, i32, i32
  }
}

</mosaic_0001>

<bundles_post_ra>
// kernel: tpu_custom_call.1
= control target key start
LH: loop header
LB: loop body
LE: loop exit
PB: predicated region body
PF: predicated region fallthrough
CT: control target
= control target key end

     0   :  { %10 = vsyncpa [#allocation5], 0  ;;  %s2424_s0 = inlined_call_operand.vmem [shape: f32[2,16,64], index: 0, kind: input, shape index: {}]   ;;  %s2425_s1 = inlined_call_operand.vmem [shape: bf16[576,64], index: 1, kind: input, shape index: {}]   ;;  %s2426_s2 = inlined_call_operand.vmem [shape: f32[1,64], index: 2, kind: input, shape index: {}]   ;;  %s2427_s3 = inlined_call_operand.vmem [shape: bf16[576,64], index: 3, kind: input, shape index: {}]   ;;  %s2428_s4 = inlined_call_operand.vmem [shape: f32[1,64], index: 4, kind: input, shape index: {}]   ;;  %s2429_s5 = inlined_call_operand.hbm [shape: f32[2,8,64], index: 5, kind: output, shape index: {}]  }
   0x1   :  { %12 = vsyncpa [#allocation5 + $0x1], 0  ;;  %s2004_s18 = smov 0   ;;  %s2006_s19 = smov 0  }
   0x2   :  { %s2008_s20 = smov 0   ;;  %s2010_s21 = smov 0  }
   0x3 LB: > { %s2025_s22 = sadd.s32 4294967295, %s1962_s21   ;;  %s1570_s23 = sadd.s32 4294967294, %s1962_s21   ;;  %s1962_s21 = sphi %s2010_s21, %s2435_s21   ;;  %s1958_s20 = sphi %s2008_s20, %s2434_s20   ;;  %s1954_s19 = sphi %s2006_s19, %s2433_s19   ;;  %s1950_s18 = sphi %s2004_s18, %s2432_s18  }
   0x4   : > { %s2029_s24 = sadd.s32 1, %s1962_s21   ;;  %s135_s25 = sadd.s32 1, %s1958_s20 }
   0x5   : > { %s132_s26 = ssub.s32 %s1962_s21, %s2029_s24  ;;  %p145_p0 = scmp.ne.s32.totalorder %s1958_s20, %s1954_s19 }
   0x6   : > { %p133_p1 = scmp.eq.s32.totalorder %s132_s26, 0  ;;  %p146_p2 = scmp.eq.s32.totalorder %s2025_s22, 1 }
   0x7   : > { %p151_p3 = scmp.ne.s32.totalorder %s1954_s19, %s1950_s18  ;;  %p152_p4 = scmp.eq.s32.totalorder %s1570_s23, 1 }
   0x8   : > { %s2040_s27 = scalar_select %p133_p1, %s1958_s20, %s135_s25  }
   0x9   : > { %p2042_p5 = por %p146_p2, %p145_p0  ;;  %p2046_p6 = por %p152_p4, %p151_p3 }
   0xa   : > { %p1573_p7 = scmp.ge.s32.totalorder %s1962_s21, 1  ;;  %p190_p8 = scmp.lt.s32.totalorder %s1962_s21, 3 }
   0xc   : > { %p191_p9 = pnand %p1573_p7, %p190_p8 }
   0xd   : > { %p218_p10 = scmp.lt.s32.totalorder (!%p191_p9), %s2025_s22, 1  ;;  %vm224_vm0 = vcmask (!%p191_p9), 581632   ;;  %vm227_vm1 = vcmask (!%p191_p9), 31744   ;;  %vm230_vm2 = vcmask (!%p191_p9), 25600   ;;  %v1964_v0 = vmov (!%p191_p9), 0.0   ;;  %s1965_s10 = smov (!%p191_p9), 4  }
   0xe   : > { %194 = sbr.rel (%p191_p9) target bundleno = 1308 (0x51c), region = 40  ;;  %225 = vst.msk [vmem:[#allocation2] sm:$0x1] (!%p191_p9), %vm224_vm0, %v1964_v0  ;;  %226 = vst.msk [vmem:[#allocation2 + $0x11] sm:$0x1] (!%p191_p9), %vm224_vm0, %v1964_v0  ;;  %vm232_vm3 = vcmask (!%p191_p9), 589344  }
   0xf   : > { %229 = vst.msk [vmem:[#allocation2 + $0x8] sm:$0xff] (!%p191_p9), %vm227_vm1, %v1964_v0  ;;  %vm235_vm4 = vcmask (!%p191_p9), 583200   ;;  %228 = vst.msk [vmem:[#allocation2] sm:$0xff] (!%p191_p9), %vm227_vm1, %v1964_v0  ;;  %v1828_v3 = vld [vmem:[%s2425_s1 + $0x40] sm:$0xff] (!%p191_p9)   ;;  %v1830_v5 = vld [vmem:[%s2425_s1 + $0x48] sm:$0xff] (!%p191_p9)   ;;  %vm247_vm5 = vcmask (!%p191_p9), 556064  }
  0x10   : > { %231 = vst.msk [vmem:[#allocation2 + $0x10] sm:$0x3] (!%p191_p9), %vm230_vm2, %v1964_v0  ;;  %v1829_v4 = vld [vmem:[%s2425_s1] sm:$0xff] (!%p191_p9)   ;;  %1658 = vmatprep.subr.bf16.mxu0 (!%p191_p9), %v1828_v3  ;;  %v1831_v8 = vld [vmem:[%s2425_s1 + $0x8] sm:$0xff] (!%p191_p9)   ;;  %v1832_v10 = vld [vmem:[%s2425_s1 + $0x50] sm:$0xff] (!%p191_p9)   ;;  %vm253_vm6 = vcmask (!%p191_p9), 523264  }
  0x11   : > { %234 = vst.msk [vmem:[#allocation2 + $0x8] sm:$0xff] (!%p191_p9), %vm232_vm3, %v1964_v0  ;;  %233 = vst.msk [vmem:[#allocation2] sm:$0xff] (!%p191_p9), %vm232_vm3, %v1964_v0  ;;  %v1833_v6 = vld [vmem:[%s2425_s1 + $0xc0] sm:$0xff] (!%p191_p9)   ;;  %1659 = vmatpush3.bf16.msra.mxu0 (!%p191_p9), %v1829_v4  ;;  %v1837_v9 = vld [vmem:[%s2425_s1 + $0xc8] sm:$0xff] (!%p191_p9)   ;;  %s1966_s11 = smov (!%p191_p9), 120   ;;  %s1967_s12 = smov (!%p191_p9), 60  }
  0x12   : > { %236 = vst.msk [vmem:[#allocation2 + $0x10] sm:$0x3] (!%p191_p9), %vm235_vm4, %v1964_v0  ;;  %v1835_v7 = vld [vmem:[%s2425_s1 + $0x80] sm:$0xff] (!%p191_p9)   ;;  %1680 = vmatprep.subr.bf16.mxu1 (!%p191_p9), %v1833_v6  ;;  %1660 = vmatprep.subr.bf16.mxu0 (!%p191_p9), %v1830_v5  ;;  %v1839_v11 = vld [vmem:[%s2425_s1 + $0x88] sm:$0xff] (!%p191_p9)   ;;  %v1834_v12 = vld [vmem:[%s2425_s1 + $0x10] sm:$0xff] (!%p191_p9)   ;;  %s1968_s17 = smov (!%p191_p9), 64  }
  0x13   : > { %1681 = vmatpush3.bf16.msra.mxu1 (!%p191_p9), %v1835_v7  ;;  %v1841_v13 = vld [vmem:[%s2425_s1 + $0xd0] sm:$0xff] (!%p191_p9)   ;;  %v1836_v14 = vld [vmem:[%s2425_s1 + $0x58] sm:$0xff] (!%p191_p9)   ;;  %v1840_v17 = vld [vmem:[%s2425_s1 + $0x60] sm:$0xff] (!%p191_p9)   ;;  %s1969_s23 = smov (!%p191_p9), 124   ;;  %s1970_s25 = smov (!%p191_p9), 56   ;;  %vm262_vm7 = vcmask (!%p191_p9), 1048064  }
  0x14   : > { %1682 = vmatprep.subr.bf16.mxu1 (!%p191_p9), %v1837_v9  ;;  %v1843_v15 = vld [vmem:[%s2425_s1 + $0x90] sm:$0xff] (!%p191_p9)   ;;  %v1838_v16 = vld [vmem:[%s2425_s1 + $0x18] sm:$0xff] (!%p191_p9)   ;;  %v1842_v18 = vld [vmem:[%s2425_s1 + $0x20] sm:$0xff] (!%p191_p9)   ;;  %vm1971_vm8 = vmmov (!%p191_p9), 0   ;;  %vm1384_vm11 = vcmask (!%p191_p9), 517120   ;;  %vm1481_vm12 = vcmask (!%p191_p9), 1041409  }
  0x15   : > { %s219_s30 = scalar_select %p218_p10, %s2025_s22, 1  ;;  %1661 = vmatpush3.bf16.msra.mxu0 %v1831_v8  ;;  %v1844_v20 = vld [vmem:[%s2425_s1 + $0x68] sm:$0xff]   ;;  %v1845_v21 = vld [vmem:[%s2425_s1 + $0xd8] sm:$0xff]   ;;  %v1848_v25 = vld [vmem:[%s2425_s1 + $0x70] sm:$0xff]   ;;  %vm1483_vm13 = vcmask 1042434   ;;  %vm1485_vm14 = vcmask 1043459  }
  0x16   : > { %1662 = vmatprep.subr.bf16.mxu0 %v1832_v10  ;;  %v1846_v22 = vld [vmem:[%s2425_s1 + $0x28] sm:$0xff]   ;;  %v1847_v23 = vld [vmem:[%s2425_s1 + $0x98] sm:$0xff]   ;;  %v1849_v26 = vld [vmem:[%s2425_s1 + $0xe0] sm:$0xff]   ;;  %s215_s7 = sand.u32 1, %s1954_s19  }
  0x17   : > { %s1657_s6 = sshll.u32 %s219_s30, 4  ;;  %1683 = vmatpush3.bf16.msra.mxu1 %v1839_v11  ;;  %v1850_v27 = vld [vmem:[%s2425_s1 + $0x30] sm:$0xff]   ;;  %v1851_v28 = vld [vmem:[%s2425_s1 + $0xa0] sm:$0xff]   ;;  %v1852_v29 = vld [vmem:[%s2425_s1 + $0x78] sm:$0xff]   ;;  %s2368_s8 = sshll.u32 %s215_s7, 3 }
  0x18   : > { %s222_s9 = scalar_lea.vmem %s2424_s0, %s1657_s6  ;;  %1684 = vmatprep.subr.bf16.mxu1 %v1841_v13  ;;  %v1853_v30 = vld [vmem:[%s2425_s1 + $0xe8] sm:$0xff]   ;;  %v1854_v31 = vld [vmem:[%s2425_s1 + $0x38] sm:$0xff]   ;;  %v1856_v38 = vld [vmem:[%s2425_s1 + $0xf0] sm:$0xff]   ;;  %s217_s13 = scalar_lea.vmem [#allocation4], %s2368_s8 }
  0x19   : > { %v237_v1 = vld [vmem:[%s222_s9] sm:$0xff]  ;;  %v238_v2 = vld [vmem:[%s222_s9 + $0x8] sm:$0xff]  ;;  %1663 = vmatpush3.bf16.msra.mxu0 %v1834_v12  ;;  %v1857_v41 = vld [vmem:[%s2425_s1 + $0xb0] sm:$0xff]   ;;  %s1654_s9 = sshll.u32 %s2025_s22, 7  ;;  %s1511_s14 = sshll.u32 %s217_s13, 4  ;;  %s2381_s14 = int_to_ptr.vmem [resolvable:$true] %s1511_s14 }
  0x1a   : > { %241 = vrot.lane.b32.xlu0 %v237_v1, %s1965_s10  ;;  %1664 = vmatprep.subr.bf16.mxu0 %v1836_v14  ;;  %v1855_v32 = vld [vmem:[%s2425_s1 + $0xa8] sm:$0xff]   ;;  %v1859_v43 = vld [vmem:[%s2425_s1 + $0xf8] sm:$0xff]   ;;  %v1858_v52 = vld [vmem:[%s2425_s1 + $0x100] sm:$0xff]   ;;  %s1498_s22 = scalar_lea.sflag [#allocation5], %s215_s7 }
  0x1b   : > { %1685 = vmatpush3.bf16.msra.mxu1 %v1843_v15  ;;  %v1860_v45 = vld [vmem:[%s2425_s1 + $0xb8] sm:$0xff]   ;;  %v1861_v57 = vld [vmem:[%s2425_s1 + $0x108] sm:$0xff]   ;;  %v1862_v58 = vld [vmem:[%s2425_s1 + $0x110] sm:$0xff]  }
  0x1c   : > { %1686 = vmatprep.subr.bf16.mxu1 %v1845_v21  ;;  %v1863_v60 = vld [vmem:[%s2425_s1 + $0x118] sm:$0xff]   ;;  %v1577_v5 = vld [vmem:[%s2426_s2] ss:$0 sm:$0xff] }
  0x1d   : > { %1665 = vmatpush3.bf16.msra.mxu0 %v1838_v16 }
  0x1e   : > { %243 = vrot.lane.b32.xlu0 %v238_v2, %s1965_s10  ;;  %1666 = vmatprep.subr.bf16.mxu0 %v1840_v17 }
  0x1f   : > { %1687 = vmatpush3.bf16.msra.mxu1 %v1847_v23 }
  0x20   : > { %1688 = vmatprep.subr.bf16.mxu1 %v1849_v26 }
  0x21   : > { %1667 = vmatpush3.bf16.msra.mxu0 %v1842_v18 }
  0x22   : > { %1668 = vmatprep.subr.bf16.mxu0 %v1844_v20 }
  0x23   : > { %1689 = vmatpush3.bf16.msra.mxu1 %v1851_v28 }
  0x24   : > { %1690 = vmatprep.subr.bf16.mxu1 %v1853_v30 }
  0x25   : > { %1669 = vmatpush3.bf16.msra.mxu0 %v1846_v22 }
  0x26   : > { %1670 = vmatprep.subr.bf16.mxu0 %v1848_v25 }
  0x27   : > { %1691 = vmatpush3.bf16.msra.mxu1 %v1855_v32 }
  0x28   : > { %1692 = vmatprep.subr.bf16.mxu1 %v1856_v38 }
  0x29   : > { %1671 = vmatpush3.bf16.msra.mxu0 %v1850_v27 }
  0x2a   : > { %1672 = vmatprep.subr.bf16.mxu0 %v1852_v29 }
  0x2b   : > { %1693 = vmatpush3.bf16.msra.mxu1 %v1857_v41 }
  0x2c   : > { %1694 = vmatprep.subr.bf16.mxu1 %v1859_v43 }
  0x2d   : > { %1673 = vmatpush3.bf16.msra.mxu0 %v1854_v31 }
  0x2e   : > { %1756 = vmatprep.subr.bf16.mxu0 %v1964_v0 }
  0x2f   : > { %1695 = vmatpush3.bf16.msra.mxu1 %v1860_v45 }
  0x8c   : > { %v242_v19 = vpop.permute.xlu0 %241 }
  0x8d   : > { %248 = vst.msk [vmem:[#allocation2 + $0x1] sm:$0xff] %vm247_vm5, %v242_v19 }
  0x90   : > { %v244_v24 = vpop.permute.xlu0 %243 }
  0x91   : > { %249 = vst.msk [vmem:[#allocation2 + $0x9] sm:$0xff] %vm247_vm5, %v244_v24 }
  0x94   : > { %v264_v33 = vld [vmem:[#allocation2] sm:$0xff] }
  0x95   : > { %v272_v42 = vld [vmem:[#allocation2 + $0x1] sm:$0xff] }
  0x98   : > { %v265_v34 = vld [vmem:[#allocation2 + $0x8] sm:$0xff] }
  0x99   : > { %v300_v35 = vld [vmem:[#allocation2 + $0x2] sm:$0xff]  ;;  %v266_v36 = vpack.c.bf16 %v265_v34, %v264_v33  ;;  %v301_v37 = vld [vmem:[#allocation2 + $0xa] sm:$0xff] }
  0x9a   : > { %v273_v39 = vld [vmem:[#allocation2 + $0x9] sm:$0xff]  ;;  %v302_v40 = vpack.c.bf16 %v301_v37, %v300_v35 }
  0x9b   : > { %268 = vrot.lane.b32.xlu1 %v266_v36, %s1966_s11  ;;  %259 = vrot.lane.b32.xlu0 %v266_v36, %s1967_s12  ;;  %254 = vst.msk [vmem:[#allocation3] sm:$0xff] %vm253_vm6, %v266_v36  ;;  %v274_v44 = vpack.c.bf16 %v273_v39, %v272_v42 }
  0x9c   : > { %299 = vst.msk [vmem:[#allocation3 + $0x18] sm:$0xff] %vm253_vm6, %v302_v40 }
  0x9f   : > { %276 = vrot.lane.b32.xlu1 %v274_v44, %s1968_s17  ;;  %304 = vrot.lane.b32.xlu0 %v302_v40, %s1967_s12 }
  0xa3   : > { %284 = vrot.lane.b32.xlu1 %v274_v44, %s1969_s23  ;;  %312 = vrot.lane.b32.xlu0 %v302_v40, %s1966_s11 }
  0xa7   : > { %292 = vrot.lane.b32.xlu1 %v274_v44, %s1970_s25 }
 0x10d   : > { %v269_v46 = vpop.permute.xlu1 %268  ;;  %v260_v47 = vpop.permute.xlu0 %259 }
 0x10e   : > { %271 = vst.msk [vmem:[#allocation3 + $0x8] sm:$0xff] %vm253_vm6, %v269_v46 }
 0x10f   : > { %263 = vst.msk [vmem:[#allocation3] sm:$0xff] %vm262_vm7, %v260_v47 }
 0x111   : > { %v277_v48 = vpop.permute.xlu1 %276  ;;  %v305_v49 = vpop.permute.xlu0 %304 }
 0x112   : > { %279 = vst.msk [vmem:[#allocation3 + $0x8] sm:$0xff] %vm262_vm7, %v277_v48  ;;  %307 = vst.msk [vmem:[#allocation3 + $0x18] sm:$0xff] %vm262_vm7, %v305_v49 }
 0x115   : > { %v285_v50 = vpop.permute.xlu1 %284  ;;  %v313_v51 = vpop.permute.xlu0 %312 }
 0x116   : > { %287 = vst.msk [vmem:[#allocation3 + $0x10] sm:$0xff] %vm253_vm6, %v285_v50  ;;  %315 = vst.msk [vmem:[#allocation3 + $0x20] sm:$0xff] %vm253_vm6, %v313_v51  ;;  %v316_v56 = vld [vmem:[#allocation3] sm:$0xff] }
 0x119   : > { %v293_v53 = vpop.permute.xlu1 %292  ;;  %v317_v54 = vld [vmem:[#allocation3 + $0x8] sm:$0xff]  ;;  %v319_v55 = vld [vmem:[#allocation3 + $0x18] sm:$0xff] }
 0x11a   : > { %295 = vst.msk [vmem:[#allocation3 + $0x10] sm:$0xff] %vm262_vm7, %v293_v53  ;;  %651 = vmatprep.mubr.bf16.mxu0 %v317_v54  ;;  %692 = vmatprep.mubr.bf16.mxu1 %v319_v55 }
 0x11b   : > { %652 = vmatmul.mubr.bf16.vlgmr.msra.gmra.mrb[0].mxu0 %v316_v56 }
 0x11c   : > { %1757 = vmatpush3.bf16.msra.mxu0 %v1858_v52  ;;  %1764 = vmatprep.mubr.msk.bf16.mxu0 %vm1971_vm8, %v1964_v0 }
 0x11d   : > { %1758 = vmatprep.subr.bf16.mxu0 %v1964_v0  ;;  %v320_v61 = vld [vmem:[#allocation3 + $0x20] sm:$0xff] }
 0x120   : > { %1759 = vmatpush3.bf16.msra.mxu0 %v1861_v57 }
 0x121   : > { %v318_v59 = vld [vmem:[#allocation3 + $0x10] sm:$0xff]  ;;  %1760 = vmatprep.subr.bf16.mxu0 %v1964_v0 }
 0x122   : > { %693 = vmatmul.mubr.bf16.vlgmr.msra.gmra.mrb[0].mxu1 %v318_v59 }
 0x124   : > { %1761 = vmatpush3.bf16.msra.mxu0 %v1862_v58 }
 0x125   : > { %1762 = vmatprep.subr.bf16.mxu0 %v1964_v0 }
 0x128   : > { %1763 = vmatpush3.bf16.msra.mxu0 %v1863_v60 }
 0x12b   : > { %1765 = vmatmul.mubr.msk.bf16.vlgmr.msra.gmra.mrb[4].mxu0 %vm253_vm6, %v320_v61 }
 0x1ee   : > { %v1674_v62 = vpop.f32.mrb[0].mxu0 }
 0x1ef   : > { %v1675_v63 = vpop.f32.mrb[1].mxu0 }
 0x1f0   : > { %v1676_v1 = vadd.f32 %v1675_v63, %v1674_v62  ;;  %v1677_v2 = vpop.f32.mrb[2].mxu0 }
 0x1f1   : > { %v1678_v3 = vpop.f32.mrb[3].mxu0 }
 0x1f2   : > { %v1679_v4 = vadd.f32 %v1678_v3, %v1677_v2  ;;  %v654_v8 = vadd.f32 %v1676_v1, %v1577_v5 }
 0x1f4   : > { %v657_v12 = vadd.f32 %v1679_v4, %v1577_v5 }
 0x1f5   : > { %v1696_v6 = vpop.f32.mrb[0].mxu1 }
 0x1f6   : > { %v1697_v7 = vpop.f32.mrb[1].mxu1 }
 0x1f7   : > { %v1698_v9 = vadd.f32 %v1697_v7, %v1696_v6  ;;  %v1699_v10 = vpop.f32.mrb[2].mxu1 }
 0x1f8   : > { %v1700_v11 = vpop.f32.mrb[3].mxu1 }
 0x1f9   : > { %v1701_v13 = vadd.f32 %v1700_v11, %v1699_v10  ;;  %v695_v14 = vadd.f32 %v1698_v9, %v654_v8  ;;  %v1864_v11 = vld [vmem:[%s2427_s3 + $0x40] sm:$0xff]  }
 0x1fa   : > { %1707 = vmatprep.subr.bf16.mxu1 %v1864_v11 }
 0x1fb   : > { %v698_v15 = vadd.f32 %v1701_v13, %v657_v12  ;;  %v1865_v12 = vld [vmem:[%s2427_s3] sm:$0xff]   ;;  %v1866_v13 = vld [vmem:[%s2427_s3 + $0x48] sm:$0xff]  }
 0x1fc   : > { %1708 = vmatpush3.bf16.msra.mxu1 %v1865_v12  ;;  %v1615_v12 = vld [vmem:[%s2428_s4] ss:$0 sm:$0xff] }
 0x1fd   : > { %1709 = vmatprep.subr.bf16.mxu1 %v1866_v13 }
 0x1fe   : > { %v735_v16 = vpop.f32.mrb[4].mxu0 }
 0x1ff   : > { %v736_v17 = vadd.f32 %v735_v16, %v695_v14  ;;  %v1766_v18 = vpop.f32.mrb[5].mxu0  ;;  %v1868_v14 = vld [vmem:[%s2427_s3 + $0xc0] sm:$0xff]   ;;  %v1872_v16 = vld [vmem:[%s2427_s3 + $0xc8] sm:$0xff]  }
 0x200   : > { %v738_v19 = vpop.f32.mrb[6].mxu0  ;;  %1729 = vmatprep.subr.bf16.mxu0 %v1868_v14  ;;  %v1870_v18 = vld [vmem:[%s2427_s3 + $0x50] sm:$0xff]  }
 0x201   : > { %v744_v20 = vmul.f32 0.2, %v736_v17  ;;  %v739_v21 = vadd.f32 %v738_v19, %v698_v15  ;;  %v1767_v22 = vpop.f32.mrb[7].mxu0  ;;  %vm742_vm9 = vcmp.ge.f32.partialorder %v736_v17, 0.0  ;;  %v1869_v15 = vld [vmem:[%s2427_s3 + $0x80] sm:$0xff]   ;;  %v1873_v19 = vld [vmem:[%s2427_s3 + $0x88] sm:$0xff]  }
 0x202   : > { %1730 = vmatpush3.bf16.msra.mxu0 %v1869_v15  ;;  %v1874_v22 = vld [vmem:[%s2427_s3 + $0x58] sm:$0xff]  }
 0x203   : > { %v745_v23 = vmul.f32 0.2, %v739_v21  ;;  %v746_v24 = vsel %vm742_vm9, %v736_v17, %v744_v20  ;;  %vm743_vm10 = vcmp.ge.f32.partialorder %v739_v21, 0.0  ;;  %v1867_v17 = vld [vmem:[%s2427_s3 + $0x8] sm:$0xff]   ;;  %1731 = vmatprep.subr.bf16.mxu0 %v1872_v16  ;;  %v1876_v20 = vld [vmem:[%s2427_s3 + $0xd0] sm:$0xff]   ;;  %vm1491_vm9 = vcmask 1046534  }
 0x204   : > { %750 = vrot.lane.b32.xlu1 %v746_v24, %s1965_s10  ;;  %1710 = vmatpush3.bf16.msra.mxu1 %v1867_v17  ;;  %v1880_v24 = vld [vmem:[%s2427_s3 + $0xd8] sm:$0xff]  }
 0x205   : > { %v747_v25 = vsel %vm743_vm10, %v739_v21, %v745_v23  ;;  %v1871_v21 = vld [vmem:[%s2427_s3 + $0x10] sm:$0xff]   ;;  %1711 = vmatprep.subr.bf16.mxu1 %v1870_v18  ;;  %vm1493_vm10 = vcmask 1047559  }
 0x206   : > { %752 = vrot.lane.b32.xlu0 %v747_v25, %s1965_s10  ;;  %1732 = vmatpush3.bf16.msra.mxu0 %v1873_v19  ;;  %v1877_v23 = vld [vmem:[%s2427_s3 + $0x90] sm:$0xff]   ;;  %v1875_v25 = vld [vmem:[%s2427_s3 + $0x18] sm:$0xff]  }
 0x207   : > { %1733 = vmatprep.subr.bf16.mxu0 %v1876_v20  ;;  %v1346_v20 = vlaneseq }
 0x208   : > { %1712 = vmatpush3.bf16.msra.mxu1 %v1871_v21 }
 0x209   : > { %1713 = vmatprep.subr.bf16.mxu1 %v1874_v22 }
 0x20a   : > { %1734 = vmatpush3.bf16.msra.mxu0 %v1877_v23 }
 0x20b   : > { %1735 = vmatprep.subr.bf16.mxu0 %v1880_v24 }
 0x20c   : > { %1714 = vmatpush3.bf16.msra.mxu1 %v1875_v25 }
 0x276   : > { %v751_v26 = vpop.permute.xlu1 %750 }
 0x277   : > { %756 = vst.msk [vmem:[#allocation2 + $0x1] sm:$0xff] %vm247_vm5, %v751_v26  ;;  %v1878_v26 = vld [vmem:[%s2427_s3 + $0x60] sm:$0xff]  }
 0x278   : > { %v753_v27 = vpop.permute.xlu0 %752  ;;  %1715 = vmatprep.subr.bf16.mxu1 %v1878_v26  ;;  %v1347_v26 = vshrl.u32 %v1346_v20, 7 }
 0x279   : > { %757 = vst.msk [vmem:[#allocation2 + $0x9] sm:$0xff] %vm247_vm5, %v753_v27  ;;  %v1881_v27 = vld [vmem:[%s2427_s3 + $0x98] sm:$0xff]  }
 0x27a   : > { %1736 = vmatpush3.bf16.msra.mxu0 %v1881_v27 }
 0x27e   : > { %v758_v28 = vld [vmem:[#allocation2] sm:$0xff] }
 0x27f   : > { %v762_v29 = vmul.f32 0.125, %v758_v28  ;;  %v760_v32 = vmul.f32 0.0625, %v758_v28  ;;  %v784_v33 = vld [vmem:[#allocation2 + $0x1] sm:$0xff] }
 0x280   : > { %v759_v30 = vld [vmem:[#allocation2 + $0x8] sm:$0xff]  ;;  %v790_v36 = vmul.f32 0.25, %v784_v33  ;;  %v786_v38 = vmul.f32 0.125, %v784_v33  ;;  %v1879_v28 = vld [vmem:[%s2427_s3 + $0x20] sm:$0xff]  }
 0x281   : > { %766 = vrot.lane.b32.xlu1 %v762_v29, %s1969_s23  ;;  %v763_v31 = vmul.f32 0.125, %v759_v30  ;;  %v761_v34 = vmul.f32 0.0625, %v759_v30  ;;  %v785_v35 = vld [vmem:[#allocation2 + $0x9] sm:$0xff]  ;;  %1716 = vmatpush3.bf16.msra.mxu1 %v1879_v28  ;;  %v1885_v33 = vld [vmem:[%s2427_s3 + $0xa0] sm:$0xff]  }
 0x282   : > { %v791_v37 = vmul.f32 0.25, %v785_v35  ;;  %v812_v39 = vld [vmem:[#allocation2 + $0x2] sm:$0xff]  ;;  %v787_v40 = vmul.f32 0.125, %v785_v35  ;;  %v813_v41 = vld [vmem:[#allocation2 + $0xa] sm:$0xff] }
 0x283   : > { %768 = vrot.lane.b32.xlu0 %v763_v31, %s1969_s23  ;;  %v818_v42 = vmul.f32 0.125, %v812_v39  ;;  %v819_v43 = vmul.f32 0.125, %v813_v41  ;;  %v814_v44 = vmul.f32 0.0625, %v812_v39  ;;  %v815_v45 = vmul.f32 0.0625, %v813_v41  ;;  %v1882_v29 = vld [vmem:[%s2427_s3 + $0x68] sm:$0xff]   ;;  %v1890_v39 = vld [vmem:[%s2427_s3 + $0x78] sm:$0xff]  }
 0x284   : > { %1717 = vmatprep.subr.bf16.mxu1 %v1882_v29  ;;  %v1883_v30 = vld [vmem:[%s2427_s3 + $0x28] sm:$0xff]   ;;  %v1892_v41 = vld [vmem:[%s2427_s3 + $0xf0] sm:$0xff]  }
 0x285   : > { %776 = vrot.lane.b32.xlu1 %v760_v32, %s1966_s11  ;;  %1718 = vmatpush3.bf16.msra.mxu1 %v1883_v30 }
 0x287   : > { %778 = vrot.lane.b32.xlu0 %v761_v34, %s1966_s11 }
 0x289   : > { %794 = vrot.lane.b32.xlu1 %v790_v36, %s1969_s23  ;;  %v1887_v36 = vld [vmem:[%s2427_s3 + $0x30] sm:$0xff]  }
 0x28b   : > { %796 = vrot.lane.b32.xlu0 %v791_v37, %s1969_s23  ;;  %v1888_v37 = vld [vmem:[%s2427_s3 + $0xe8] sm:$0xff]  }
 0x28d   : > { %804 = vrot.lane.b32.xlu1 %v786_v38, %s1966_s11 }
 0x28f   : > { %806 = vrot.lane.b32.xlu0 %v787_v40, %s1966_s11 }
 0x291   : > { %822 = vrot.lane.b32.xlu1 %v818_v42, %s1969_s23 }
 0x293   : > { %824 = vrot.lane.b32.xlu0 %v819_v43, %s1969_s23 }
 0x295   : > { %832 = vrot.lane.b32.xlu1 %v814_v44, %s1966_s11 }
 0x297   : > { %834 = vrot.lane.b32.xlu0 %v815_v45, %s1966_s11 }
 0x2f3   : > { %v767_v46 = vpop.permute.xlu1 %766 }
 0x2f4   : > { %v772_v48 = vadd.f32 %v767_v46, %v760_v32  ;;  %v1884_v32 = vld [vmem:[%s2427_s3 + $0xe0] sm:$0xff]  }
 0x2f5   : > { %v769_v47 = vpop.permute.xlu0 %768  ;;  %1737 = vmatprep.subr.bf16.mxu0 %v1884_v32 }
 0x2f6   : > { %v773_v50 = vadd.f32 %v769_v47, %v761_v34  ;;  %v1886_v34 = vld [vmem:[%s2427_s3 + $0x70] sm:$0xff]   ;;  %1738 = vmatpush3.bf16.msra.mxu0 %v1885_v33 }
 0x2f7   : > { %v777_v49 = vpop.permute.xlu1 %776  ;;  %1719 = vmatprep.subr.bf16.mxu1 %v1886_v34  ;;  %1739 = vmatprep.subr.bf16.mxu0 %v1888_v37 }
 0x2f8   : > { %v782_v51 = vadd.f32 %v777_v49, %v772_v48  ;;  %1720 = vmatpush3.bf16.msra.mxu1 %v1887_v36 }
 0x2f9   : > { %v779_v52 = vpop.permute.xlu0 %778  ;;  %1721 = vmatprep.subr.bf16.mxu1 %v1890_v39 }
 0x2fa   : > { %v783_v53 = vadd.f32 %v779_v52, %v773_v50  ;;  %v788_v54 = vadd.f32 %v786_v38, %v782_v51  ;;  %v1889_v38 = vld [vmem:[%s2427_s3 + $0xa8] sm:$0xff]   ;;  %v1895_v52 = vld [vmem:[%s2427_s3 + $0xf8] sm:$0xff]  }
 0x2fb   : > { %v795_v55 = vpop.permute.xlu1 %794  ;;  %1740 = vmatpush3.bf16.msra.mxu0 %v1889_v38 }
 0x2fc   : > { %v789_v56 = vadd.f32 %v787_v40, %v783_v53  ;;  %v800_v58 = vadd.f32 %v795_v55, %v788_v54  ;;  %v1891_v40 = vld [vmem:[%s2427_s3 + $0x38] sm:$0xff]   ;;  %1741 = vmatprep.subr.bf16.mxu0 %v1892_v41 }
 0x2fd   : > { %v797_v57 = vpop.permute.xlu0 %796  ;;  %1722 = vmatpush3.bf16.msra.mxu1 %v1891_v40  ;;  %v1896_v53 = vld [vmem:[%s2427_s3 + $0xb8] sm:$0xff]  }
 0x2fe   : > { %v801_v60 = vadd.f32 %v797_v57, %v789_v56  ;;  %1768 = vmatprep.subr.bf16.mxu1 %v1964_v0 }
 0x2ff   : > { %v805_v59 = vpop.permute.xlu1 %804 }
 0x300   : > { %v810_v61 = vadd.f32 %v805_v59, %v800_v58 }
 0x301   : > { %v807_v62 = vpop.permute.xlu0 %806 }
 0x302   : > { %v811_v63 = vadd.f32 %v807_v62, %v801_v60  ;;  %v816_v1 = vadd.f32 %v814_v44, %v810_v61  ;;  %v1893_v44 = vld [vmem:[%s2427_s3 + $0xb0] sm:$0xff]   ;;  %v1894_v61 = vld [vmem:[%s2427_s3 + $0x100] sm:$0xff]  }
 0x303   : > { %v823_v2 = vpop.permute.xlu1 %822  ;;  %1742 = vmatpush3.bf16.msra.mxu0 %v1893_v44 }
 0x304   : > { %v817_v3 = vadd.f32 %v815_v45, %v811_v63  ;;  %v828_v5 = vadd.f32 %v823_v2, %v816_v1  ;;  %1743 = vmatprep.subr.bf16.mxu0 %v1895_v52  ;;  %v1897_v1 = vld [vmem:[%s2427_s3 + $0x108] sm:$0xff]  }
 0x305   : > { %v825_v4 = vpop.permute.xlu0 %824 }
 0x306   : > { %v829_v7 = vadd.f32 %v825_v4, %v817_v3  ;;  %v1898_v4 = vld [vmem:[%s2427_s3 + $0x110] sm:$0xff]  }
 0x307   : > { %v833_v6 = vpop.permute.xlu1 %832  ;;  %1744 = vmatpush3.bf16.msra.mxu0 %v1896_v53 }
 0x308   : > { %v838_v8 = vadd.f32 %v833_v6, %v828_v5  ;;  %v1899_v5 = vld [vmem:[%s2427_s3 + $0x118] sm:$0xff]  }
 0x309   : > { %v835_v9 = vpop.permute.xlu0 %834 }
 0x30a   : > { %v839_v10 = vadd.f32 %v835_v9, %v829_v7  ;;  %842 = vrot.lane.b32.xlu1 %v838_v8, %s1965_s10 }
 0x30c   : > { %844 = vrot.lane.b32.xlu0 %v839_v10, %s1965_s10 }
 0x37c   : > { %v843_v31 = vpop.permute.xlu1 %842 }
 0x37d   : > { %848 = vst.msk [vmem:[#allocation2 + $0x1] sm:$0xff] %vm247_vm5, %v843_v31 }
 0x37e   : > { %v845_v35 = vpop.permute.xlu0 %844 }
 0x37f   : > { %849 = vst.msk [vmem:[#allocation2 + $0x9] sm:$0xff] %vm247_vm5, %v845_v35  ;;  %vm1487_vm5 = vcmask 1044484  }
 0x384   : > { %v870_v42 = vld [vmem:[#allocation2 + $0x1] sm:$0xff] }
 0x385   : > { %v862_v43 = vld [vmem:[#allocation2] sm:$0xff] }
 0x386   : > { %v871_v45 = vld [vmem:[#allocation2 + $0x9] sm:$0xff] }
 0x387   : > { %v863_v46 = vld [vmem:[#allocation2 + $0x8] sm:$0xff]  ;;  %v872_v48 = vpack.c.bf16 %v871_v45, %v870_v42 }
 0x388   : > { %v898_v47 = vld [vmem:[#allocation2 + $0x2] sm:$0xff]  ;;  %v864_v49 = vpack.c.bf16 %v863_v46, %v862_v43  ;;  %v899_v50 = vld [vmem:[#allocation2 + $0xa] sm:$0xff] }
 0x389   : > { %v900_v51 = vpack.c.bf16 %v899_v50, %v898_v47  ;;  %874 = vrot.lane.b32.xlu0 %v872_v48, %s1968_s17  ;;  %s1900_s17 = scalar_lea.vmem %s2381_s14, 128 }
 0x38a   : > { %866 = vrot.lane.b32.xlu1 %v864_v49, %s1966_s11  ;;  %853 = vst.msk [vmem:[#allocation3] sm:$0xff] %vm253_vm6, %v864_v49  ;;  %p1901_p11 = scmp.ne.s32.totalorder %s2381_s14, %s1900_s17 }
 0x38b   : > { %897 = vst.msk [vmem:[#allocation3 + $0x18] sm:$0xff] %vm253_vm6, %v900_v51 }
 0x38c   : > { %p1902_p12 = pnand %p1901_p11, %p2042_p5 }
 0x38d   : > { %882 = vrot.lane.b32.xlu0 %v872_v48, %s1969_s23  ;;  %s1973_s23 = smov [#allocation4]  }
 0x38e   : > { %858 = vrot.lane.b32.xlu1 %v864_v49, %s1967_s12  ;;  %p1903_p13 = pneg %p1902_p12 }
 0x391   : > { %890 = vrot.lane.b32.xlu0 %v872_v48, %s1970_s25  ;;  %s1904_s25 = sshll.u32 %s1973_s23, 4  ;;  %s1905_s25 = int_to_ptr.vmem [resolvable:$false] %s1904_s25 }
 0x392   : > { %902 = vrot.lane.b32.xlu1 %v900_v51, %s1967_s12  ;;  %s2379_s12 = scalar_lea.hbm %s2429_s5, %s1654_s9  ;;  %s1906_s16 = scalar_lea.vmem %s1905_s25, 256 }
 0x393   : > { %p1907_p0 = scmp.lt.s32.totalorder %s2381_s14, %s1905_s25  ;;  %p1908_p1 = scmp.lt.s32.totalorder %s1906_s16, %s1900_s17 }
 0x395   : > { %p1909_p2 = por %p1908_p1, %p1907_p0 }
 0x396   : > { %910 = vrot.lane.b32.xlu1 %v900_v51, %s1966_s11 }
 0x397   : > { %p1910_p3 = pnand %p1909_p2, %p1903_p13 }
 0x3fb   : > { %v875_v54 = vpop.permute.xlu0 %874 }
 0x3fc   : > { %v867_v55 = vpop.permute.xlu1 %866 }
 0x3fd   : > { %869 = vst.msk [vmem:[#allocation3 + $0x8] sm:$0xff] %vm253_vm6, %v867_v55 }
 0x3fe   : > { %877 = vst.msk [vmem:[#allocation3 + $0x8] sm:$0xff] %vm262_vm7, %v875_v54 }
 0x3ff   : > { %v883_v56 = vpop.permute.xlu0 %882 }
 0x400   : > { %v859_v57 = vpop.permute.xlu1 %858  ;;  %885 = vst.msk [vmem:[#allocation3 + $0x10] sm:$0xff] %vm253_vm6, %v883_v56 }
 0x401   : > { %861 = vst.msk [vmem:[#allocation3] sm:$0xff] %vm262_vm7, %v859_v57 }
 0x403   : > { %v891_v58 = vpop.permute.xlu0 %890 }
 0x404   : > { %v903_v59 = vpop.permute.xlu1 %902  ;;  %893 = vst.msk [vmem:[#allocation3 + $0x10] sm:$0xff] %vm262_vm7, %v891_v58 }
 0x405   : > { %905 = vst.msk [vmem:[#allocation3 + $0x18] sm:$0xff] %vm262_vm7, %v903_v59  ;;  %v915_v60 = vld [vmem:[#allocation3 + $0x8] sm:$0xff] }
 0x406   : > { %1249 = vmatprep.mubr.bf16.mxu1 %v915_v60 }
 0x408   : > { %v911_v62 = vpop.permute.xlu1 %910  ;;  %v914_v63 = vld [vmem:[#allocation3] sm:$0xff] }
 0x409   : > { %913 = vst.msk [vmem:[#allocation3 + $0x20] sm:$0xff] %vm253_vm6, %v911_v62  ;;  %1250 = vmatmul.mubr.bf16.vlgmr.msra.gmra.mrb[4].mxu1 %v914_v63 }
 0x40a   : > { %1769 = vmatpush3.bf16.msra.mxu1 %v1894_v61  ;;  %1776 = vmatprep.mubr.msk.bf16.mxu1 %vm1971_vm8, %v1964_v0  ;;  %vm1489_vm8 = vcmask 1045509  }
 0x40b   : > { %1770 = vmatprep.subr.bf16.mxu1 %v1964_v0  ;;  %v916_v3 = vld [vmem:[#allocation3 + $0x10] sm:$0xff] }
 0x40c   : > { %v917_v2 = vld [vmem:[#allocation3 + $0x18] sm:$0xff] }
 0x40d   : > { %1290 = vmatprep.mubr.bf16.mxu0 %v917_v2 }
 0x40e   : > { %1771 = vmatpush3.bf16.msra.mxu1 %v1897_v1  ;;  %1291 = vmatmul.mubr.bf16.vlgmr.msra.gmra.mrb[8].mxu0 %v916_v3 }
 0x40f   : > { %1772 = vmatprep.subr.bf16.mxu1 %v1964_v0 }
 0x410   : > { %v918_v6 = vld [vmem:[#allocation3 + $0x20] sm:$0xff] }
 0x412   : > { %1773 = vmatpush3.bf16.msra.mxu1 %v1898_v4 }
 0x413   : > { %1774 = vmatprep.subr.bf16.mxu1 %v1964_v0  ;;  %v1972_v0 = vmov 1983009808  }
 0x414   : > { %v1344_v19 = vunpack.c.l.s4 %v1972_v0 }
 0x416   : > { %1775 = vmatpush3.bf16.msra.mxu1 %v1899_v5  ;;  %v1345_v25 = vunpack.c.0.s8 %v1344_v19 }
 0x418   : > { %v1348_v28 = vsub.s32 %v1345_v25, %v1347_v26 }
 0x419   : > { %1777 = vmatmul.mubr.msk.bf16.vlgmr.msra.gmra.mrb[8].mxu1 %vm253_vm6, %v918_v6 }
 0x4dc   : > { %v1723_v7 = vpop.f32.mrb[4].mxu1 }
 0x4dd   : > { %v1724_v8 = vpop.f32.mrb[5].mxu1 }
 0x4de   : > { %v1725_v9 = vadd.f32 %v1724_v8, %v1723_v7  ;;  %v1726_v10 = vpop.f32.mrb[6].mxu1 }
 0x4df   : > { %v1727_v11 = vpop.f32.mrb[7].mxu1 }
 0x4e0   : > { %v1728_v13 = vadd.f32 %v1727_v11, %v1726_v10  ;;  %v1252_v16 = vadd.f32 %v1725_v9, %v1615_v12 }
 0x4e1   : > { %v1745_v14 = vpop.f32.mrb[8].mxu0 }
 0x4e2   : > { %v1746_v15 = vpop.f32.mrb[9].mxu0  ;;  %v1255_v22 = vadd.f32 %v1728_v13, %v1615_v12 }
 0x4e3   : > { %v1747_v17 = vadd.f32 %v1746_v15, %v1745_v14  ;;  %v1748_v18 = vpop.f32.mrb[10].mxu0 }
 0x4e4   : > { %v1749_v21 = vpop.f32.mrb[11].mxu0 }
 0x4e5   : > { %v1750_v23 = vadd.f32 %v1749_v21, %v1748_v18  ;;  %v1293_v24 = vadd.f32 %v1747_v17, %v1252_v16 }
 0x4e7   : > { %v1296_v27 = vadd.f32 %v1750_v23, %v1255_v22 }
 0x4ec   : > { %v1333_v29 = vpop.f32.mrb[8].mxu1 }
 0x4ed   : > { %v1334_v30 = vadd.f32 %v1333_v29, %v1293_v24  ;;  %v1778_v31 = vpop.f32.mrb[9].mxu1 }
 0x4ee   : > { %v1336_v32 = vpop.f32.mrb[10].mxu1 }
 0x4ef   : > { %v1342_v33 = vcombine.high %v1334_v30, %v1334_v30  ;;  %v1349_v34 = vrot.slane %v1334_v30, %v1348_v28  ;;  %v1337_v35 = vadd.f32 %v1336_v32, %v1296_v27  ;;  %v1779_v36 = vpop.f32.mrb[11].mxu1 }
 0x4f1   : > { %v1356_v37 = vrot.slane %v1342_v33, %v1348_v28  ;;  %v1357_v38 = vcombine.high %v1349_v34, %v1349_v34  ;;  %v1385_v39 = vsel %vm1384_vm11, %v1349_v34, 0.0  ;;  %v1359_v40 = vcombine.high %v1337_v35, %v1337_v35 }
 0x4f2   : > { %v1386_v41 = vrot.slane %v1385_v39, 4  ;;  %v1366_v42 = vrot.slane %v1337_v35, %v1348_v28 }
 0x4f3   : > { %v1358_v43 = vcombine.high %v1356_v37, %v1356_v37  ;;  %v1392_v44 = vsel %vm1384_vm11, %v1357_v38, 0.0  ;;  %v1399_v45 = vsel %vm1384_vm11, %v1356_v37, 0.0  ;;  %v1373_v46 = vrot.slane %v1359_v40, %v1348_v28 }
 0x4f4   : > { %v1387_v47 = vadd.f32 %v1386_v41, %v1385_v39  ;;  %v1393_v48 = vrot.slane %v1392_v44, 4  ;;  %v1400_v49 = vrot.slane %v1399_v45, 4  ;;  %v1374_v50 = vcombine.high %v1366_v42, %v1366_v42 }
 0x4f5   : > { %v1406_v51 = vsel %vm1384_vm11, %v1358_v43, 0.0  ;;  %v1375_v52 = vcombine.high %v1373_v46, %v1373_v46  ;;  %v1413_v53 = vsel %vm1384_vm11, %v1366_v42, 0.0  ;;  %v1427_v54 = vsel %vm1384_vm11, %v1373_v46, 0.0 }
 0x4f6   : > { %v1388_v55 = vrot.slane %v1387_v47, 2  ;;  %v1394_v56 = vadd.f32 %v1393_v48, %v1392_v44  ;;  %v1401_v57 = vadd.f32 %v1400_v49, %v1399_v45  ;;  %v1407_v58 = vrot.slane %v1406_v51, 4 }
 0x4f7   : > { %v1414_v59 = vrot.slane %v1413_v53, 4  ;;  %v1420_v60 = vsel %vm1384_vm11, %v1374_v50, 0.0  ;;  %v1428_v61 = vrot.slane %v1427_v54, 4  ;;  %v1434_v62 = vsel %vm1384_vm11, %v1375_v52, 0.0 }
 0x4f8   : > { %v1389_v63 = vadd.f32 %v1388_v55, %v1387_v47  ;;  %v1395_v1 = vrot.slane %v1394_v56, 2  ;;  %v1402_v2 = vrot.slane %v1401_v57, 2  ;;  %v1408_v3 = vadd.f32 %v1407_v58, %v1406_v51 }
 0x4f9   : > { %v1415_v4 = vadd.f32 %v1414_v59, %v1413_v53  ;;  %v1421_v5 = vrot.slane %v1420_v60, 4  ;;  %v1429_v6 = vadd.f32 %v1428_v61, %v1427_v54  ;;  %v1435_v7 = vrot.slane %v1434_v62, 4 }
 0x4fa   : > { %v1390_v8 = vrot.slane %v1389_v63, 1  ;;  %v1396_v9 = vadd.f32 %v1395_v1, %v1394_v56  ;;  %v1403_v10 = vadd.f32 %v1402_v2, %v1401_v57  ;;  %v1409_v11 = vrot.slane %v1408_v3, 2 }
 0x4fb   : > { %v1416_v12 = vrot.slane %v1415_v4, 2  ;;  %v1422_v13 = vadd.f32 %v1421_v5, %v1420_v60  ;;  %v1430_v14 = vrot.slane %v1429_v6, 2  ;;  %v1436_v15 = vadd.f32 %v1435_v7, %v1434_v62 }
 0x4fc   : > { %v1391_v16 = vadd.f32 %v1390_v8, %v1389_v63  ;;  %v1397_v17 = vrot.slane %v1396_v9, 1  ;;  %v1404_v18 = vrot.slane %v1403_v10, 1  ;;  %v1410_v0 = vadd.f32 %v1409_v11, %v1408_v3 }
 0x4fd   : > { %v1417_v19 = vadd.f32 %v1416_v12, %v1415_v4  ;;  %v1423_v20 = vrot.slane %v1422_v13, 2  ;;  %v1431_v21 = vadd.f32 %v1430_v14, %v1429_v6  ;;  %v1437_v22 = vrot.slane %v1436_v15, 2 }
 0x4fe   : > { %v1398_v23 = vadd.f32 %v1397_v17, %v1396_v9  ;;  %v1405_v24 = vadd.f32 %v1404_v18, %v1403_v10  ;;  %v1411_v25 = vrot.slane %v1410_v0, 1  ;;  %v1441_v26 = vmul.f32 0.5, %v1391_v16 }
 0x4ff   : > { %v1418_v27 = vrot.slane %v1417_v19, 1  ;;  %v1424_v28 = vadd.f32 %v1423_v20, %v1422_v13  ;;  %v1432_v29 = vrot.slane %v1431_v21, 1  ;;  %v1438_v30 = vadd.f32 %v1437_v22, %v1436_v15 }
 0x500   : > { %v1412_v31 = vadd.f32 %v1411_v25, %v1410_v0  ;;  %v1442_v32 = vmul.f32 0.5, %v1398_v23  ;;  %v1443_v33 = vmul.f32 0.5, %v1405_v24  ;;  %vm1449_vm15 = vcmp.ge.f32.partialorder %v1441_v26, 0.0 }
 0x501   : > { %v1457_v34 = vmul.f32 0.2, %v1441_v26  ;;  %v1419_v35 = vadd.f32 %v1418_v27, %v1417_v19  ;;  %v1425_v36 = vrot.slane %v1424_v28, 1  ;;  %v1433_v37 = vadd.f32 %v1432_v29, %v1431_v21 }
 0x502   : > { %v1444_v38 = vmul.f32 0.5, %v1412_v31  ;;  %vm1450_vm0 = vcmp.ge.f32.partialorder %v1442_v32, 0.0  ;;  %vm1451_vm1 = vcmp.ge.f32.partialorder %v1443_v33, 0.0  ;;  %v1458_v39 = vmul.f32 0.2, %v1442_v32 }
 0x503   : > { %v1459_v40 = vmul.f32 0.2, %v1443_v33  ;;  %v1465_v41 = vsel %vm1449_vm15, %v1441_v26, %v1457_v34  ;;  %v1426_v42 = vadd.f32 %v1425_v36, %v1424_v28  ;;  %v1439_v43 = vrot.slane %v1438_v30, 1 }
 0x504   : > { %vm1452_vm2 = vcmp.ge.f32.partialorder %v1444_v38, 0.0  ;;  %v1460_v44 = vmul.f32 0.2, %v1444_v38  ;;  %v1466_v45 = vsel %vm1450_vm0, %v1442_v32, %v1458_v39  ;;  %v1445_v46 = vmul.f32 0.5, %v1419_v35 }
 0x505   : > { %v1467_v47 = vsel %vm1451_vm1, %v1443_v33, %v1459_v40  ;;  %v1482_v48 = vsel %vm1481_vm12, %v1466_v45, %v1465_v41  ;;  %v1446_v49 = vmul.f32 0.5, %v1426_v42  ;;  %v1447_v50 = vmul.f32 0.5, %v1433_v37 }
 0x506   : > { %vm1453_vm3 = vcmp.ge.f32.partialorder %v1445_v46, 0.0  ;;  %v1461_v51 = vmul.f32 0.2, %v1445_v46  ;;  %v1440_v52 = vadd.f32 %v1439_v43, %v1438_v30  ;;  %v1468_v53 = vsel %vm1452_vm2, %v1444_v38, %v1460_v44 }
 0x507   : > { %v1462_v54 = vmul.f32 0.2, %v1446_v49  ;;  %vm1454_vm4 = vcmp.ge.f32.partialorder %v1446_v49, 0.0  ;;  %v1463_v55 = vmul.f32 0.2, %v1447_v50  ;;  %vm1455_vm7 = vcmp.ge.f32.partialorder %v1447_v50, 0.0 }
 0x508   : > { %v1448_v56 = vmul.f32 0.5, %v1440_v52  ;;  %v1484_v57 = vsel %vm1483_vm13, %v1467_v47, %v1482_v48  ;;  %v1469_v58 = vsel %vm1453_vm3, %v1445_v46, %v1461_v51 }
 0x509   : > { %v1486_v59 = vsel %vm1485_vm14, %v1468_v53, %v1484_v57  ;;  %v1470_v61 = vsel %vm1454_vm4, %v1446_v49, %v1462_v54  ;;  %v1471_v63 = vsel %vm1455_vm7, %v1447_v50, %v1463_v55 }
 0x50a   : > { %vm1456_vm11 = vcmp.ge.f32.partialorder %v1448_v56, 0.0  ;;  %v1464_v60 = vmul.f32 0.2, %v1448_v56  ;;  %v1488_v62 = vsel %vm1487_vm5, %v1469_v58, %v1486_v59 }
 0x50b   : > { %v1490_v1 = vsel %vm1489_vm8, %v1470_v61, %v1488_v62 }
 0x50c   : > { %v1472_v2 = vsel %vm1456_vm11, %v1448_v56, %v1464_v60  ;;  %v1492_v3 = vsel %vm1491_vm9, %v1471_v63, %v1490_v1 }
 0x50d   : > { %v1494_v4 = vsel %vm1493_vm10, %v1472_v2, %v1492_v3 }
 0x50e   : > { %1496 = vst.msk [vmem:[%s217_s13] sm:$0xff] %vm253_vm6, %v1494_v4 }
 0x50f   : > { %1913 = shalt.err (!%p1910_p3)
}
 0x510   : > { %s1914_s10 = scalar_lea.hbm %s2379_s12, 128  ;;  %s1918_s6 = scalar_lea.hbm %s2429_s5, 256 }
 0x511   : > { %p1915_p4 = scmp.ne.s32.totalorder %s2379_s12, %s1914_s10  ;;  %p1919_p9 = scmp.lt.u32.totalorder %s2379_s12, %s2429_s5 }
 0x512   : > { %p1920_p10 = scmp.lt.u32.totalorder %s1918_s6, %s1914_s10  ;;  %p1922_p12 = scmp.lt.u32.totalorder %s1914_s10, %s2379_s12 }
 0x513   : > { %p1916_p7 = pnand %p1915_p4, %p2042_p5 }
 0x514   : > { %p1921_p11 = por %p1920_p10, %p1919_p9 }
 0x515   : > { %p1917_p8 = pneg %p1916_p7 }
 0x516   : > { %p1923_p13 = por %p1922_p12, %p1921_p11 }
 0x518   : > { %p1924_p0 = pnand %p1923_p13, %p1917_p8 }
 0x51a   : > { %1927 = shalt.err (!%p1924_p0)
}
 0x51b   : > { %1780 = dma.vmem_to_hbm [thread:$0]  (%p2042_p5), %s2381_s14, 128, %s2379_s12, %s1498_s22  }
 0x51c PF: > { %p1786_p1 = scmp.ge.s32.totalorder %s1962_s21, 2  ;;  %s1523_s9 = sand.u32 1, %s1950_s18  }
 0x51d   : > { %s1524_s13 = scalar_lea.sflag [#allocation5], %s1523_s9 }
 0x51e   : > { %p1783_p2 = pnand %p1786_p1, %p2046_p6 }
 0x520   : > { %1945 = dma.done.wait (!%p1783_p2), %s1524_s13, 128  }
 0x521   : > { %1947 = vsyncadd (!%p1783_p2), %s1524_s13, 4294967168  ;;  %p15_p3 = scmp.ge.s32.totalorder %s2029_s24, 4   ;;  %s2432_s18 = smov %s1954_s19 }
 0x522   : > { %s2433_s19 = smov %s1958_s20  ;;  %s2434_s20 = smov %s2040_s27 }
 0x523   : > { %s2435_s21 = smov %s2029_s24  ;;  %17 = sbr.rel (!%p15_p3) target bundleno = 3 (0x3), region = 75 }
 0x52a   :  { %1529 = vsyncpa [#allocation5], 1 }
 0x52b   :  { %1531 = vsyncpa [#allocation5 + $0x1], 1 }

</bundles_post_ra>
